<compile_context>
chip_gen: v5e
topology: v5e:2x2
jax: 0.10.0
libtpu: 0.0.40
codegen_flags: <defaults>
</compile_context>

<pallas_src>
import jax
import jax.numpy as jnp
from jax.experimental import pallas as pl
from jax.experimental.pallas import tpu as pltpu

# ---- static config -----------------------------------------------------------
N = 8                      # batch: N*L == 128 -> every lane of the f32 vreg is valid data
C_IN = 4                   # in_channels
C_OUT = 4                  # out_channels (== C_IN, stride==1 -> residual used)
L = 16                     # sequence length
EXPANSION = 2
C_MID = C_IN * EXPANSION   # 8
K = 3                      # depthwise kernel size
SE_RATIO = 4
C_RED = max(1, C_MID // SE_RATIO)   # 2
BN_EPS = 1e-5
NUM_BLOCKS = 3             # identical residual MBConv1d blocks fused into one pallas_call

# on-chip layout: one full f32 vreg per activation tensor
C_PAD = 8                  # sublane dim (== C_MID)
LANES = 128                # lane dim
NL = N * L
assert NL == LANES, "batch*length must fill the 128-lane vreg exactly"

# plane indices inside one block's parameter slab (each plane: lane-replicated (8,128))
P_W_EXP = 0                    # C_IN planes
P_W_DW = P_W_EXP + C_IN        # K planes
P_W_SE1 = P_W_DW + K           # C_MID planes (rows >= C_RED are zero)
P_W_SE2 = P_W_SE1 + C_MID      # C_RED planes
P_W_PROJ = P_W_SE2 + C_RED     # C_MID planes (rows >= C_OUT are zero)
P_S1 = P_W_PROJ + C_MID
P_B1 = P_S1 + 1
P_S2 = P_B1 + 1
P_B2 = P_S2 + 1
P_BSE1 = P_B2 + 1
P_BSE2 = P_BSE1 + 1
P_S3 = P_BSE2 + 1
P_B3 = P_S3 + 1
NUM_PLANES = P_B3 + 1          # 33 planes/block


# ---- Pallas kernel: whole batch, NUM_BLOCKS fused, single invocation ------------
def mbconv_stack_kernel(x_ref, p_ref, o_ref):
    lane = jax.lax.broadcasted_iota(jnp.int32, (C_PAD, LANES), 1)
    pos = lane % L                     # position within a sample
    not_first = pos != 0
    not_last = pos != L - 1

    x = x_ref[...]                     # (8, 128): rows 0:C_IN valid, rows C_IN: zero

    for b in range(NUM_BLOCKS):        # static unroll; activation stays in registers/VMEM
        base = b * NUM_PLANES

        def P(i, base=base):           # full-vreg load of a pre-broadcast parameter plane
            return p_ref[base + i]

        # --- expand 1x1 conv (VPU MADs over C_IN) + BN1 + ReLU ---
        h = P(P_W_EXP) * x[0:1, :]
        for c in range(1, C_IN):
            h = h + P(P_W_EXP + c) * x[c:c + 1, :]
        h = jnp.maximum(h * P(P_S1) + P(P_B1), 0.0)

        # --- depthwise conv k=3, stride 1, pad 1 (XLU rolls + boundary masks) + BN2 + ReLU ---
        h_m1 = jnp.where(not_first, pltpu.roll(h, shift=1, axis=1), 0.0)         # h[:, t-1]
        h_p1 = jnp.where(not_last, pltpu.roll(h, shift=LANES - 1, axis=1), 0.0)  # h[:, t+1]
        h = P(P_W_DW) * h_m1 + P(P_W_DW + 1) * h + P(P_W_DW + 2) * h_p1
        h = jnp.maximum(h * P(P_S2) + P(P_B2), 0.0)

        # --- Squeeze-and-Excitation: per-sample mean via log2(L) masked roll+add tree ---
        # segmented inclusive prefix sum within each aligned 16-lane sample
        s = h
        sh = 1
        while sh < L:
            s = s + jnp.where(pos >= sh, pltpu.roll(s, shift=sh, axis=1), 0.0)
            sh *= 2
        # lane pos == L-1 now holds the sample sum; spread it back over the sample's lanes
        t = jnp.where(pos == L - 1, s, 0.0)
        sh = 1
        while sh < L:
            t = t + jnp.where(pos + sh <= L - 1,
                              pltpu.roll(t, shift=LANES - sh, axis=1), 0.0)
            sh *= 2
        s_full = t * (1.0 / L)                           # per-sample mean on every lane

        r = P(P_W_SE1) * s_full[0:1, :]
        for c in range(1, C_MID):
            r = r + P(P_W_SE1 + c) * s_full[c:c + 1, :]
        r = jnp.maximum(r + P(P_BSE1), 0.0)              # rows >= C_RED stay zero

        g = P(P_W_SE2) * r[0:1, :]
        for j in range(1, C_RED):
            g = g + P(P_W_SE2 + j) * r[j:j + 1, :]
        g = jax.nn.sigmoid(g + P(P_BSE2))
        h = h * g

        # --- project 1x1 conv + BN3 + residual (dropout / stoch. depth identity in eval) ---
        y = P(P_W_PROJ) * h[0:1, :]
        for c in range(1, C_MID):
            y = y + P(P_W_PROJ + c) * h[c:c + 1, :]
        y = y * P(P_S3) + P(P_B3)                        # rows >= C_OUT are zero
        x = y + x                                        # padding rows of x stay zero

    o_ref[...] = x


# ---- host-side packing helpers (params packed ONCE at weight-load time) ----------
def pack_x(x):
    """(N, C_IN, L) -> lane-dense (C_PAD, LANES), channel rows padded with zeros."""
    xc = jnp.transpose(x, (1, 0, 2)).reshape(C_IN, NL)
    return jnp.zeros((C_PAD, LANES), jnp.float32).at[:C_IN, :].set(xc)


def unpack_out(o):
    """(C_PAD, LANES) -> (N, C_OUT, L)."""
    return jnp.transpose(o[:C_OUT, :].reshape(C_OUT, N, L), (1, 0, 2))


def _plane(col):
    """1-D/(c,1) column -> zero-padded to C_PAD rows, replicated across all 128 lanes."""
    col = jnp.asarray(col, jnp.float32).reshape(-1)
    col = jnp.pad(col, (0, C_PAD - col.shape[0]))
    return jnp.broadcast_to(col[:, None], (C_PAD, LANES))


def pack_block_planes(bp):
    (w_exp, s1, b1, w_dw, s2, b2,
     w_se1, bse1, w_se2, bse2, w_proj, s3, b3) = bp
    planes = []
    planes += [_plane(w_exp[:, c]) for c in range(C_IN)]     # (C_MID,) each
    planes += [_plane(w_dw[:, k]) for k in range(K)]         # (C_MID,) each
    planes += [_plane(w_se1[:, c]) for c in range(C_MID)]    # (C_RED,) -> zero-padded rows
    planes += [_plane(w_se2[:, j]) for j in range(C_RED)]    # (C_MID,) each
    planes += [_plane(w_proj[:, c]) for c in range(C_MID)]   # (C_OUT,) -> zero-padded rows
    planes += [_plane(s1), _plane(b1), _plane(s2), _plane(b2),
               _plane(bse1), _plane(bse2), _plane(s3), _plane(b3)]
    assert len(planes) == NUM_PLANES
    return jnp.stack(planes)                                  # (NUM_PLANES, C_PAD, LANES)


def pack_params(block_params):
    """Precompute once (weight-load time), NOT per forward call."""
    return jnp.concatenate([pack_block_planes(bp) for bp in block_params], axis=0)


def mbconv_stack(x, planes):
    """x: (N, C_IN, L) f32.  planes: (NUM_BLOCKS*NUM_PLANES, C_PAD, LANES) pre-packed."""
    xp = pack_x(x)
    out = pl.pallas_call(
        mbconv_stack_kernel,
        out_shape=jax.ShapeDtypeStruct((C_PAD, LANES), jnp.float32),
    )(xp, planes)
    return unpack_out(out)


# ---- plain-JAX reference (for correctness check) ---------------------------------
def ref_block(x, bp):
    (w_exp, s1, b1, w_dw, s2, b2,
     w_se1, bse1, w_se2, bse2, w_proj, s3, b3) = bp
    h = jnp.einsum('oc,ncl->nol', w_exp, x)
    h = jnp.maximum(h * s1[None] + b1[None], 0.0)
    hp = jnp.pad(h, ((0, 0), (0, 0), (K // 2, K // 2)))
    acc = jnp.zeros_like(h)
    for k in range(K):
        acc = acc + w_dw[None, :, k:k + 1] * hp[:, :, k:k + L]
    h = jnp.maximum(acc * s2[None] + b2[None], 0.0)
    s = jnp.mean(h, axis=2, keepdims=True)
    r = jnp.maximum(jnp.einsum('rc,ncl->nrl', w_se1, s) + bse1[None], 0.0)
    g = jax.nn.sigmoid(jnp.einsum('cr,nrl->ncl', w_se2, r) + bse2[None])
    h = h * g
    y = jnp.einsum('oc,ncl->nol', w_proj, h)
    y = y * s3[None] + b3[None]
    return y + x


def ref_forward(x, block_params):
    for bp in block_params:
        x = ref_block(x, bp)
    return x


def fold_bn(gamma, beta, mean, var):
    scale = gamma / jnp.sqrt(var + BN_EPS)
    shift = beta - mean * scale
    return scale.reshape(-1, 1), shift.reshape(-1, 1)


if __name__ == "__main__":
    key = jax.random.PRNGKey(0)
    kx, key = jax.random.split(key)
    x = jax.random.normal(kx, (N, C_IN, L), dtype=jnp.float32)

    def bn_params(k, c):
        kg, kb, km, kv = jax.random.split(k, 4)
        gamma = 1.0 + 0.1 * jax.random.normal(kg, (c,), jnp.float32)
        beta = 0.1 * jax.random.normal(kb, (c,), jnp.float32)
        mean = 0.1 * jax.random.normal(km, (c,), jnp.float32)
        var = 1.0 + 0.2 * jax.random.uniform(kv, (c,), jnp.float32)
        return fold_bn(gamma, beta, mean, var)

    block_params = []
    for b in range(NUM_BLOCKS):
        keys = jax.random.split(jax.random.fold_in(key, b), 10)
        w_exp = 0.3 * jax.random.normal(keys[0], (C_MID, C_IN), jnp.float32)
        w_dw = 0.3 * jax.random.normal(keys[1], (C_MID, K), jnp.float32)
        w_se1 = 0.3 * jax.random.normal(keys[2], (C_RED, C_MID), jnp.float32)
        b_se1 = 0.1 * jax.random.normal(keys[3], (C_RED,), jnp.float32).reshape(-1, 1)
        w_se2 = 0.3 * jax.random.normal(keys[4], (C_MID, C_RED), jnp.float32)
        b_se2 = 0.1 * jax.random.normal(keys[5], (C_MID,), jnp.float32).reshape(-1, 1)
        w_proj = 0.3 * jax.random.normal(keys[6], (C_OUT, C_MID), jnp.float32)
        s1, b1 = bn_params(keys[7], C_MID)
        s2, b2 = bn_params(keys[8], C_MID)
        s3, b3 = bn_params(keys[9], C_OUT)
        block_params.append((w_exp, s1, b1, w_dw, s2, b2,
                             w_se1, b_se1, w_se2, b_se2, w_proj, s3, b3))

    # Hoisted out of the per-call path: the param slab is built exactly once here.
    planes = pack_params(block_params)

    run = jax.jit(mbconv_stack)
    out = jax.block_until_ready(run(x, planes))

    ref = ref_forward(x, block_params)
    assert out.shape == (N, C_OUT, L)
    assert jnp.allclose(out, ref, atol=1e-4, rtol=1e-4), "mismatch vs reference"

    print("KERNEL_OK")
</pallas_src>

<mosaic_0001>
module attributes {stable_mosaic.version = 11 : i64} {
  func.func @mbconv_stack_kernel(%arg0: memref<8x128xf32, #tpu.memory_space<vmem>>, %arg1: memref<99x8x128xf32, #tpu.memory_space<vmem>>, %arg2: memref<8x128xf32, #tpu.memory_space<vmem>>) attributes {dimension_semantics = [], scalar_prefetch = 0 : i64, scratch_operands = 0 : i64, tpu.core_type = #tpu.core_type<tc>} {
    %0 = tpu.iota {dimensions = array<i32: 1>} : vector<8x128xi32>
    %c16_i32 = arith.constant 16 : i32
    %c0_i32 = arith.constant 0 : i32
    %1 = arith.cmpi eq, %c16_i32, %c0_i32 : i32
    %c1_i32 = arith.constant 1 : i32
    %2 = arith.select %1, %c1_i32, %c16_i32 : i32
    %3 = vector.broadcast %2 : i32 to vector<8x128xi32>
    %4 = arith.remsi %0, %3 : vector<8x128xi32>
    %c0_i32_0 = arith.constant 0 : i32
    %5 = vector.broadcast %c0_i32_0 : i32 to vector<8x128xi32>
    %6 = arith.cmpi ne, %4, %5 : vector<8x128xi32>
    %c0_i32_1 = arith.constant 0 : i32
    %7 = vector.broadcast %c0_i32_1 : i32 to vector<8x128xi32>
    %8 = arith.cmpi slt, %4, %7 : vector<8x128xi32>
    %c0_i32_2 = arith.constant 0 : i32
    %9 = arith.cmpi slt, %2, %c0_i32_2 : i32
    %10 = vector.broadcast %9 : i1 to vector<8x128xi1>
    %11 = vector.broadcast %10 : vector<8x128xi1> to vector<8x128xi1>
    %12 = arith.xori %8, %11 : vector<8x128xi1>
    %13 = arith.andi %12, %6 : vector<8x128xi1>
    %14 = vector.broadcast %2 : i32 to vector<8x128xi32>
    %15 = arith.addi %4, %14 : vector<8x128xi32>
    %16 = arith.select %13, %15, %4 : vector<8x128xi1>, vector<8x128xi32>
    %c0_i32_3 = arith.constant 0 : i32
    %17 = vector.broadcast %c0_i32_3 : i32 to vector<8x128xi32>
    %18 = arith.cmpi ne, %16, %17 : vector<8x128xi32>
    %c15_i32 = arith.constant 15 : i32
    %19 = vector.broadcast %c15_i32 : i32 to vector<8x128xi32>
    %20 = arith.cmpi ne, %16, %19 : vector<8x128xi32>
    %c0 = arith.constant 0 : index
    %c0_4 = arith.constant 0 : index
    %21 = vector.load %arg0[%c0, %c0_4] : memref<8x128xf32, #tpu.memory_space<vmem>>, vector<8x128xf32>
    %c0_5 = arith.constant 0 : index
    %c0_6 = arith.constant 0 : index
    %c0_7 = arith.constant 0 : index
    %22 = vector.load %arg1[%c0_5, %c0_6, %c0_7] : memref<99x8x128xf32, #tpu.memory_space<vmem>>, vector<1x8x128xf32>
    %23 = vector.shape_cast %22 : vector<1x8x128xf32> to vector<8x128xf32>
    %24 = vector.extract_strided_slice %21 {offsets = [0, 0], sizes = [1, 128], strides = [1, 1]} : vector<8x128xf32> to vector<1x128xf32>
    %25 = vector.broadcast %24 : vector<1x128xf32> to vector<8x128xf32>
    %26 = arith.mulf %23, %25 : vector<8x128xf32>
    %c1 = arith.constant 1 : index
    %c0_8 = arith.constant 0 : index
    %c0_9 = arith.constant 0 : index
    %27 = vector.load %arg1[%c1, %c0_8, %c0_9] : memref<99x8x128xf32, #tpu.memory_space<vmem>>, vector<1x8x128xf32>
    %28 = vector.shape_cast %27 : vector<1x8x128xf32> to vector<8x128xf32>
    %29 = vector.extract_strided_slice %21 {offsets = [1, 0], sizes = [1, 128], strides = [1, 1]} : vector<8x128xf32> to vector<1x128xf32>
    %30 = vector.broadcast %29 : vector<1x128xf32> to vector<8x128xf32>
    %31 = arith.mulf %28, %30 : vector<8x128xf32>
    %32 = arith.addf %26, %31 : vector<8x128xf32>
    %c2 = arith.constant 2 : index
    %c0_10 = arith.constant 0 : index
    %c0_11 = arith.constant 0 : index
    %33 = vector.load %arg1[%c2, %c0_10, %c0_11] : memref<99x8x128xf32, #tpu.memory_space<vmem>>, vector<1x8x128xf32>
    %34 = vector.shape_cast %33 : vector<1x8x128xf32> to vector<8x128xf32>
    %35 = vector.extract_strided_slice %21 {offsets = [2, 0], sizes = [1, 128], strides = [1, 1]} : vector<8x128xf32> to vector<1x128xf32>
    %36 = vector.broadcast %35 : vector<1x128xf32> to vector<8x128xf32>
    %37 = arith.mulf %34, %36 : vector<8x128xf32>
    %38 = arith.addf %32, %37 : vector<8x128xf32>
    %c3 = arith.constant 3 : index
    %c0_12 = arith.constant 0 : index
    %c0_13 = arith.constant 0 : index
    %39 = vector.load %arg1[%c3, %c0_12, %c0_13] : memref<99x8x128xf32, #tpu.memory_space<vmem>>, vector<1x8x128xf32>
    %40 = vector.shape_cast %39 : vector<1x8x128xf32> to vector<8x128xf32>
    %41 = vector.extract_strided_slice %21 {offsets = [3, 0], sizes = [1, 128], strides = [1, 1]} : vector<8x128xf32> to vector<1x128xf32>
    %42 = vector.broadcast %41 : vector<1x128xf32> to vector<8x128xf32>
    %43 = arith.mulf %40, %42 : vector<8x128xf32>
    %44 = arith.addf %38, %43 : vector<8x128xf32>
    %c25 = arith.constant 25 : index
    %c0_14 = arith.constant 0 : index
    %c0_15 = arith.constant 0 : index
    %45 = vector.load %arg1[%c25, %c0_14, %c0_15] : memref<99x8x128xf32, #tpu.memory_space<vmem>>, vector<1x8x128xf32>
    %46 = vector.shape_cast %45 : vector<1x8x128xf32> to vector<8x128xf32>
    %47 = arith.mulf %44, %46 : vector<8x128xf32>
    %c26 = arith.constant 26 : index
    %c0_16 = arith.constant 0 : index
    %c0_17 = arith.constant 0 : index
    %48 = vector.load %arg1[%c26, %c0_16, %c0_17] : memref<99x8x128xf32, #tpu.memory_space<vmem>>, vector<1x8x128xf32>
    %49 = vector.shape_cast %48 : vector<1x8x128xf32> to vector<8x128xf32>
    %50 = arith.addf %47, %49 : vector<8x128xf32>
    %cst = arith.constant 0.000000e+00 : f32
    %51 = vector.broadcast %cst : f32 to vector<8x128xf32>
    %52 = arith.maximumf %50, %51 : vector<8x128xf32>
    %c1_i32_18 = arith.constant 1 : i32
    %53 = tpu.dynamic_rotate %52 by %c1_i32_18 dim 1 : vector<8x128xf32>, i32 -> vector<8x128xf32>
    %cst_19 = arith.constant 0.000000e+00 : f32
    %54 = vector.broadcast %cst_19 : f32 to vector<8x128xf32>
    %55 = arith.select %18, %53, %54 : vector<8x128xi1>, vector<8x128xf32>
    %c127_i32 = arith.constant 127 : i32
    %56 = tpu.dynamic_rotate %52 by %c127_i32 dim 1 : vector<8x128xf32>, i32 -> vector<8x128xf32>
    %cst_20 = arith.constant 0.000000e+00 : f32
    %57 = vector.broadcast %cst_20 : f32 to vector<8x128xf32>
    %58 = arith.select %20, %56, %57 : vector<8x128xi1>, vector<8x128xf32>
    %c4 = arith.constant 4 : index
    %c0_21 = arith.constant 0 : index
    %c0_22 = arith.constant 0 : index
    %59 = vector.load %arg1[%c4, %c0_21, %c0_22] : memref<99x8x128xf32, #tpu.memory_space<vmem>>, vector<1x8x128xf32>
    %60 = vector.shape_cast %59 : vector<1x8x128xf32> to vector<8x128xf32>
    %61 = arith.mulf %60, %55 : vector<8x128xf32>
    %c5 = arith.constant 5 : index
    %c0_23 = arith.constant 0 : index
    %c0_24 = arith.constant 0 : index
    %62 = vector.load %arg1[%c5, %c0_23, %c0_24] : memref<99x8x128xf32, #tpu.memory_space<vmem>>, vector<1x8x128xf32>
    %63 = vector.shape_cast %62 : vector<1x8x128xf32> to vector<8x128xf32>
    %64 = arith.mulf %63, %52 : vector<8x128xf32>
    %65 = arith.addf %61, %64 : vector<8x128xf32>
    %c6 = arith.constant 6 : index
    %c0_25 = arith.constant 0 : index
    %c0_26 = arith.constant 0 : index
    %66 = vector.load %arg1[%c6, %c0_25, %c0_26] : memref<99x8x128xf32, #tpu.memory_space<vmem>>, vector<1x8x128xf32>
    %67 = vector.shape_cast %66 : vector<1x8x128xf32> to vector<8x128xf32>
    %68 = arith.mulf %67, %58 : vector<8x128xf32>
    %69 = arith.addf %65, %68 : vector<8x128xf32>
    %c27 = arith.constant 27 : index
    %c0_27 = arith.constant 0 : index
    %c0_28 = arith.constant 0 : index
    %70 = vector.load %arg1[%c27, %c0_27, %c0_28] : memref<99x8x128xf32, #tpu.memory_space<vmem>>, vector<1x8x128xf32>
    %71 = vector.shape_cast %70 : vector<1x8x128xf32> to vector<8x128xf32>
    %72 = arith.mulf %69, %71 : vector<8x128xf32>
    %c28 = arith.constant 28 : index
    %c0_29 = arith.constant 0 : index
    %c0_30 = arith.constant 0 : index
    %73 = vector.load %arg1[%c28, %c0_29, %c0_30] : memref<99x8x128xf32, #tpu.memory_space<vmem>>, vector<1x8x128xf32>
    %74 = vector.shape_cast %73 : vector<1x8x128xf32> to vector<8x128xf32>
    %75 = arith.addf %72, %74 : vector<8x128xf32>
    %cst_31 = arith.constant 0.000000e+00 : f32
    %76 = vector.broadcast %cst_31 : f32 to vector<8x128xf32>
    %77 = arith.maximumf %75, %76 : vector<8x128xf32>
    %c1_i32_32 = arith.constant 1 : i32
    %78 = vector.broadcast %c1_i32_32 : i32 to vector<8x128xi32>
    %79 = arith.cmpi sge, %16, %78 : vector<8x128xi32>
    %c1_i32_33 = arith.constant 1 : i32
    %80 = tpu.dynamic_rotate %77 by %c1_i32_33 dim 1 : vector<8x128xf32>, i32 -> vector<8x128xf32>
    %cst_34 = arith.constant 0.000000e+00 : f32
    %81 = vector.broadcast %cst_34 : f32 to vector<8x128xf32>
    %82 = arith.select %79, %80, %81 : vector<8x128xi1>, vector<8x128xf32>
    %83 = arith.addf %77, %82 : vector<8x128xf32>
    %c2_i32 = arith.constant 2 : i32
    %84 = vector.broadcast %c2_i32 : i32 to vector<8x128xi32>
    %85 = arith.cmpi sge, %16, %84 : vector<8x128xi32>
    %c2_i32_35 = arith.constant 2 : i32
    %86 = tpu.dynamic_rotate %83 by %c2_i32_35 dim 1 : vector<8x128xf32>, i32 -> vector<8x128xf32>
    %cst_36 = arith.constant 0.000000e+00 : f32
    %87 = vector.broadcast %cst_36 : f32 to vector<8x128xf32>
    %88 = arith.select %85, %86, %87 : vector<8x128xi1>, vector<8x128xf32>
    %89 = arith.addf %83, %88 : vector<8x128xf32>
    %c4_i32 = arith.constant 4 : i32
    %90 = vector.broadcast %c4_i32 : i32 to vector<8x128xi32>
    %91 = arith.cmpi sge, %16, %90 : vector<8x128xi32>
    %c4_i32_37 = arith.constant 4 : i32
    %92 = tpu.dynamic_rotate %89 by %c4_i32_37 dim 1 : vector<8x128xf32>, i32 -> vector<8x128xf32>
    %cst_38 = arith.constant 0.000000e+00 : f32
    %93 = vector.broadcast %cst_38 : f32 to vector<8x128xf32>
    %94 = arith.select %91, %92, %93 : vector<8x128xi1>, vector<8x128xf32>
    %95 = arith.addf %89, %94 : vector<8x128xf32>
    %c8_i32 = arith.constant 8 : i32
    %96 = vector.broadcast %c8_i32 : i32 to vector<8x128xi32>
    %97 = arith.cmpi sge, %16, %96 : vector<8x128xi32>
    %c8_i32_39 = arith.constant 8 : i32
    %98 = tpu.dynamic_rotate %95 by %c8_i32_39 dim 1 : vector<8x128xf32>, i32 -> vector<8x128xf32>
    %cst_40 = arith.constant 0.000000e+00 : f32
    %99 = vector.broadcast %cst_40 : f32 to vector<8x128xf32>
    %100 = arith.select %97, %98, %99 : vector<8x128xi1>, vector<8x128xf32>
    %101 = arith.addf %95, %100 : vector<8x128xf32>
    %c15_i32_41 = arith.constant 15 : i32
    %102 = vector.broadcast %c15_i32_41 : i32 to vector<8x128xi32>
    %103 = arith.cmpi eq, %16, %102 : vector<8x128xi32>
    %cst_42 = arith.constant 0.000000e+00 : f32
    %104 = vector.broadcast %cst_42 : f32 to vector<8x128xf32>
    %105 = arith.select %103, %101, %104 : vector<8x128xi1>, vector<8x128xf32>
    %c1_i32_43 = arith.constant 1 : i32
    %106 = vector.broadcast %c1_i32_43 : i32 to vector<8x128xi32>
    %107 = arith.addi %16, %106 : vector<8x128xi32>
    %c15_i32_44 = arith.constant 15 : i32
    %108 = vector.broadcast %c15_i32_44 : i32 to vector<8x128xi32>
    %109 = arith.cmpi sle, %107, %108 : vector<8x128xi32>
    %c127_i32_45 = arith.constant 127 : i32
    %110 = tpu.dynamic_rotate %105 by %c127_i32_45 dim 1 : vector<8x128xf32>, i32 -> vector<8x128xf32>
    %cst_46 = arith.constant 0.000000e+00 : f32
    %111 = vector.broadcast %cst_46 : f32 to vector<8x128xf32>
    %112 = arith.select %109, %110, %111 : vector<8x128xi1>, vector<8x128xf32>
    %113 = arith.addf %105, %112 : vector<8x128xf32>
    %c2_i32_47 = arith.constant 2 : i32
    %114 = vector.broadcast %c2_i32_47 : i32 to vector<8x128xi32>
    %115 = arith.addi %16, %114 : vector<8x128xi32>
    %c15_i32_48 = arith.constant 15 : i32
    %116 = vector.broadcast %c15_i32_48 : i32 to vector<8x128xi32>
    %117 = arith.cmpi sle, %115, %116 : vector<8x128xi32>
    %c126_i32 = arith.constant 126 : i32
    %118 = tpu.dynamic_rotate %113 by %c126_i32 dim 1 : vector<8x128xf32>, i32 -> vector<8x128xf32>
    %cst_49 = arith.constant 0.000000e+00 : f32
    %119 = vector.broadcast %cst_49 : f32 to vector<8x128xf32>
    %120 = arith.select %117, %118, %119 : vector<8x128xi1>, vector<8x128xf32>
    %121 = arith.addf %113, %120 : vector<8x128xf32>
    %c4_i32_50 = arith.constant 4 : i32
    %122 = vector.broadcast %c4_i32_50 : i32 to vector<8x128xi32>
    %123 = arith.addi %16, %122 : vector<8x128xi32>
    %c15_i32_51 = arith.constant 15 : i32
    %124 = vector.broadcast %c15_i32_51 : i32 to vector<8x128xi32>
    %125 = arith.cmpi sle, %123, %124 : vector<8x128xi32>
    %c124_i32 = arith.constant 124 : i32
    %126 = tpu.dynamic_rotate %121 by %c124_i32 dim 1 : vector<8x128xf32>, i32 -> vector<8x128xf32>
    %cst_52 = arith.constant 0.000000e+00 : f32
    %127 = vector.broadcast %cst_52 : f32 to vector<8x128xf32>
    %128 = arith.select %125, %126, %127 : vector<8x128xi1>, vector<8x128xf32>
    %129 = arith.addf %121, %128 : vector<8x128xf32>
    %c8_i32_53 = arith.constant 8 : i32
    %130 = vector.broadcast %c8_i32_53 : i32 to vector<8x128xi32>
    %131 = arith.addi %16, %130 : vector<8x128xi32>
    %c15_i32_54 = arith.constant 15 : i32
    %132 = vector.broadcast %c15_i32_54 : i32 to vector<8x128xi32>
    %133 = arith.cmpi sle, %131, %132 : vector<8x128xi32>
    %c120_i32 = arith.constant 120 : i32
    %134 = tpu.dynamic_rotate %129 by %c120_i32 dim 1 : vector<8x128xf32>, i32 -> vector<8x128xf32>
    %cst_55 = arith.constant 0.000000e+00 : f32
    %135 = vector.broadcast %cst_55 : f32 to vector<8x128xf32>
    %136 = arith.select %133, %134, %135 : vector<8x128xi1>, vector<8x128xf32>
    %137 = arith.addf %129, %136 : vector<8x128xf32>
    %cst_56 = arith.constant 6.250000e-02 : f32
    %138 = vector.broadcast %cst_56 : f32 to vector<8x128xf32>
    %139 = arith.mulf %137, %138 : vector<8x128xf32>
    %c7 = arith.constant 7 : index
    %c0_57 = arith.constant 0 : index
    %c0_58 = arith.constant 0 : index
    %140 = vector.load %arg1[%c7, %c0_57, %c0_58] : memref<99x8x128xf32, #tpu.memory_space<vmem>>, vector<1x8x128xf32>
    %141 = vector.shape_cast %140 : vector<1x8x128xf32> to vector<8x128xf32>
    %142 = vector.extract_strided_slice %139 {offsets = [0, 0], sizes = [1, 128], strides = [1, 1]} : vector<8x128xf32> to vector<1x128xf32>
    %143 = vector.broadcast %142 : vector<1x128xf32> to vector<8x128xf32>
    %144 = arith.mulf %141, %143 : vector<8x128xf32>
    %c8 = arith.constant 8 : index
    %c0_59 = arith.constant 0 : index
    %c0_60 = arith.constant 0 : index
    %145 = vector.load %arg1[%c8, %c0_59, %c0_60] : memref<99x8x128xf32, #tpu.memory_space<vmem>>, vector<1x8x128xf32>
    %146 = vector.shape_cast %145 : vector<1x8x128xf32> to vector<8x128xf32>
    %147 = vector.extract_strided_slice %139 {offsets = [1, 0], sizes = [1, 128], strides = [1, 1]} : vector<8x128xf32> to vector<1x128xf32>
    %148 = vector.broadcast %147 : vector<1x128xf32> to vector<8x128xf32>
    %149 = arith.mulf %146, %148 : vector<8x128xf32>
    %150 = arith.addf %144, %149 : vector<8x128xf32>
    %c9 = arith.constant 9 : index
    %c0_61 = arith.constant 0 : index
    %c0_62 = arith.constant 0 : index
    %151 = vector.load %arg1[%c9, %c0_61, %c0_62] : memref<99x8x128xf32, #tpu.memory_space<vmem>>, vector<1x8x128xf32>
    %152 = vector.shape_cast %151 : vector<1x8x128xf32> to vector<8x128xf32>
    %153 = vector.extract_strided_slice %139 {offsets = [2, 0], sizes = [1, 128], strides = [1, 1]} : vector<8x128xf32> to vector<1x128xf32>
    %154 = vector.broadcast %153 : vector<1x128xf32> to vector<8x128xf32>
    %155 = arith.mulf %152, %154 : vector<8x128xf32>
    %156 = arith.addf %150, %155 : vector<8x128xf32>
    %c10 = arith.constant 10 : index
    %c0_63 = arith.constant 0 : index
    %c0_64 = arith.constant 0 : index
    %157 = vector.load %arg1[%c10, %c0_63, %c0_64] : memref<99x8x128xf32, #tpu.memory_space<vmem>>, vector<1x8x128xf32>
    %158 = vector.shape_cast %157 : vector<1x8x128xf32> to vector<8x128xf32>
    %159 = vector.extract_strided_slice %139 {offsets = [3, 0], sizes = [1, 128], strides = [1, 1]} : vector<8x128xf32> to vector<1x128xf32>
    %160 = vector.broadcast %159 : vector<1x128xf32> to vector<8x128xf32>
    %161 = arith.mulf %158, %160 : vector<8x128xf32>
    %162 = arith.addf %156, %161 : vector<8x128xf32>
    %c11 = arith.constant 11 : index
    %c0_65 = arith.constant 0 : index
    %c0_66 = arith.constant 0 : index
    %163 = vector.load %arg1[%c11, %c0_65, %c0_66] : memref<99x8x128xf32, #tpu.memory_space<vmem>>, vector<1x8x128xf32>
    %164 = vector.shape_cast %163 : vector<1x8x128xf32> to vector<8x128xf32>
    %165 = vector.extract_strided_slice %139 {offsets = [4, 0], sizes = [1, 128], strides = [1, 1]} : vector<8x128xf32> to vector<1x128xf32>
    %166 = vector.broadcast %165 : vector<1x128xf32> to vector<8x128xf32>
    %167 = arith.mulf %164, %166 : vector<8x128xf32>
    %168 = arith.addf %162, %167 : vector<8x128xf32>
    %c12 = arith.constant 12 : index
    %c0_67 = arith.constant 0 : index
    %c0_68 = arith.constant 0 : index
    %169 = vector.load %arg1[%c12, %c0_67, %c0_68] : memref<99x8x128xf32, #tpu.memory_space<vmem>>, vector<1x8x128xf32>
    %170 = vector.shape_cast %169 : vector<1x8x128xf32> to vector<8x128xf32>
    %171 = vector.extract_strided_slice %139 {offsets = [5, 0], sizes = [1, 128], strides = [1, 1]} : vector<8x128xf32> to vector<1x128xf32>
    %172 = vector.broadcast %171 : vector<1x128xf32> to vector<8x128xf32>
    %173 = arith.mulf %170, %172 : vector<8x128xf32>
    %174 = arith.addf %168, %173 : vector<8x128xf32>
    %c13 = arith.constant 13 : index
    %c0_69 = arith.constant 0 : index
    %c0_70 = arith.constant 0 : index
    %175 = vector.load %arg1[%c13, %c0_69, %c0_70] : memref<99x8x128xf32, #tpu.memory_space<vmem>>, vector<1x8x128xf32>
    %176 = vector.shape_cast %175 : vector<1x8x128xf32> to vector<8x128xf32>
    %177 = vector.extract_strided_slice %139 {offsets = [6, 0], sizes = [1, 128], strides = [1, 1]} : vector<8x128xf32> to vector<1x128xf32>
    %178 = vector.broadcast %177 : vector<1x128xf32> to vector<8x128xf32>
    %179 = arith.mulf %176, %178 : vector<8x128xf32>
    %180 = arith.addf %174, %179 : vector<8x128xf32>
    %c14 = arith.constant 14 : index
    %c0_71 = arith.constant 0 : index
    %c0_72 = arith.constant 0 : index
    %181 = vector.load %arg1[%c14, %c0_71, %c0_72] : memref<99x8x128xf32, #tpu.memory_space<vmem>>, vector<1x8x128xf32>
    %182 = vector.shape_cast %181 : vector<1x8x128xf32> to vector<8x128xf32>
    %183 = vector.extract_strided_slice %139 {offsets = [7, 0], sizes = [1, 128], strides = [1, 1]} : vector<8x128xf32> to vector<1x128xf32>
    %184 = vector.broadcast %183 : vector<1x128xf32> to vector<8x128xf32>
    %185 = arith.mulf %182, %184 : vector<8x128xf32>
    %186 = arith.addf %180, %185 : vector<8x128xf32>
    %c29 = arith.constant 29 : index
    %c0_73 = arith.constant 0 : index
    %c0_74 = arith.constant 0 : index
    %187 = vector.load %arg1[%c29, %c0_73, %c0_74] : memref<99x8x128xf32, #tpu.memory_space<vmem>>, vector<1x8x128xf32>
    %188 = vector.shape_cast %187 : vector<1x8x128xf32> to vector<8x128xf32>
    %189 = arith.addf %186, %188 : vector<8x128xf32>
    %cst_75 = arith.constant 0.000000e+00 : f32
    %190 = vector.broadcast %cst_75 : f32 to vector<8x128xf32>
    %191 = arith.maximumf %189, %190 : vector<8x128xf32>
    %c15 = arith.constant 15 : index
    %c0_76 = arith.constant 0 : index
    %c0_77 = arith.constant 0 : index
    %192 = vector.load %arg1[%c15, %c0_76, %c0_77] : memref<99x8x128xf32, #tpu.memory_space<vmem>>, vector<1x8x128xf32>
    %193 = vector.shape_cast %192 : vector<1x8x128xf32> to vector<8x128xf32>
    %194 = vector.extract_strided_slice %191 {offsets = [0, 0], sizes = [1, 128], strides = [1, 1]} : vector<8x128xf32> to vector<1x128xf32>
    %195 = vector.broadcast %194 : vector<1x128xf32> to vector<8x128xf32>
    %196 = arith.mulf %193, %195 : vector<8x128xf32>
    %c16 = arith.constant 16 : index
    %c0_78 = arith.constant 0 : index
    %c0_79 = arith.constant 0 : index
    %197 = vector.load %arg1[%c16, %c0_78, %c0_79] : memref<99x8x128xf32, #tpu.memory_space<vmem>>, vector<1x8x128xf32>
    %198 = vector.shape_cast %197 : vector<1x8x128xf32> to vector<8x128xf32>
    %199 = vector.extract_strided_slice %191 {offsets = [1, 0], sizes = [1, 128], strides = [1, 1]} : vector<8x128xf32> to vector<1x128xf32>
    %200 = vector.broadcast %199 : vector<1x128xf32> to vector<8x128xf32>
    %201 = arith.mulf %198, %200 : vector<8x128xf32>
    %202 = arith.addf %196, %201 : vector<8x128xf32>
    %c30 = arith.constant 30 : index
    %c0_80 = arith.constant 0 : index
    %c0_81 = arith.constant 0 : index
    %203 = vector.load %arg1[%c30, %c0_80, %c0_81] : memref<99x8x128xf32, #tpu.memory_space<vmem>>, vector<1x8x128xf32>
    %204 = vector.shape_cast %203 : vector<1x8x128xf32> to vector<8x128xf32>
    %205 = arith.addf %202, %204 : vector<8x128xf32>
    %206 = arith.negf %205 : vector<8x128xf32>
    %207 = math.exp %206 : vector<8x128xf32>
    %cst_82 = arith.constant 1.000000e+00 : f32
    %208 = vector.broadcast %cst_82 : f32 to vector<8x128xf32>
    %209 = arith.addf %208, %207 : vector<8x128xf32>
    %210 = arith.divf %208, %209 : vector<8x128xf32>
    %211 = arith.mulf %77, %210 : vector<8x128xf32>
    %c17 = arith.constant 17 : index
    %c0_83 = arith.constant 0 : index
    %c0_84 = arith.constant 0 : index
    %212 = vector.load %arg1[%c17, %c0_83, %c0_84] : memref<99x8x128xf32, #tpu.memory_space<vmem>>, vector<1x8x128xf32>
    %213 = vector.shape_cast %212 : vector<1x8x128xf32> to vector<8x128xf32>
    %214 = vector.extract_strided_slice %211 {offsets = [0, 0], sizes = [1, 128], strides = [1, 1]} : vector<8x128xf32> to vector<1x128xf32>
    %215 = vector.broadcast %214 : vector<1x128xf32> to vector<8x128xf32>
    %216 = arith.mulf %213, %215 : vector<8x128xf32>
    %c18 = arith.constant 18 : index
    %c0_85 = arith.constant 0 : index
    %c0_86 = arith.constant 0 : index
    %217 = vector.load %arg1[%c18, %c0_85, %c0_86] : memref<99x8x128xf32, #tpu.memory_space<vmem>>, vector<1x8x128xf32>
    %218 = vector.shape_cast %217 : vector<1x8x128xf32> to vector<8x128xf32>
    %219 = vector.extract_strided_slice %211 {offsets = [1, 0], sizes = [1, 128], strides = [1, 1]} : vector<8x128xf32> to vector<1x128xf32>
    %220 = vector.broadcast %219 : vector<1x128xf32> to vector<8x128xf32>
    %221 = arith.mulf %218, %220 : vector<8x128xf32>
    %222 = arith.addf %216, %221 : vector<8x128xf32>
    %c19 = arith.constant 19 : index
    %c0_87 = arith.constant 0 : index
    %c0_88 = arith.constant 0 : index
    %223 = vector.load %arg1[%c19, %c0_87, %c0_88] : memref<99x8x128xf32, #tpu.memory_space<vmem>>, vector<1x8x128xf32>
    %224 = vector.shape_cast %223 : vector<1x8x128xf32> to vector<8x128xf32>
    %225 = vector.extract_strided_slice %211 {offsets = [2, 0], sizes = [1, 128], strides = [1, 1]} : vector<8x128xf32> to vector<1x128xf32>
    %226 = vector.broadcast %225 : vector<1x128xf32> to vector<8x128xf32>
    %227 = arith.mulf %224, %226 : vector<8x128xf32>
    %228 = arith.addf %222, %227 : vector<8x128xf32>
    %c20 = arith.constant 20 : index
    %c0_89 = arith.constant 0 : index
    %c0_90 = arith.constant 0 : index
    %229 = vector.load %arg1[%c20, %c0_89, %c0_90] : memref<99x8x128xf32, #tpu.memory_space<vmem>>, vector<1x8x128xf32>
    %230 = vector.shape_cast %229 : vector<1x8x128xf32> to vector<8x128xf32>
    %231 = vector.extract_strided_slice %211 {offsets = [3, 0], sizes = [1, 128], strides = [1, 1]} : vector<8x128xf32> to vector<1x128xf32>
    %232 = vector.broadcast %231 : vector<1x128xf32> to vector<8x128xf32>
    %233 = arith.mulf %230, %232 : vector<8x128xf32>
    %234 = arith.addf %228, %233 : vector<8x128xf32>
    %c21 = arith.constant 21 : index
    %c0_91 = arith.constant 0 : index
    %c0_92 = arith.constant 0 : index
    %235 = vector.load %arg1[%c21, %c0_91, %c0_92] : memref<99x8x128xf32, #tpu.memory_space<vmem>>, vector<1x8x128xf32>
    %236 = vector.shape_cast %235 : vector<1x8x128xf32> to vector<8x128xf32>
    %237 = vector.extract_strided_slice %211 {offsets = [4, 0], sizes = [1, 128], strides = [1, 1]} : vector<8x128xf32> to vector<1x128xf32>
    %238 = vector.broadcast %237 : vector<1x128xf32> to vector<8x128xf32>
    %239 = arith.mulf %236, %238 : vector<8x128xf32>
    %240 = arith.addf %234, %239 : vector<8x128xf32>
    %c22 = arith.constant 22 : index
    %c0_93 = arith.constant 0 : index
    %c0_94 = arith.constant 0 : index
    %241 = vector.load %arg1[%c22, %c0_93, %c0_94] : memref<99x8x128xf32, #tpu.memory_space<vmem>>, vector<1x8x128xf32>
    %242 = vector.shape_cast %241 : vector<1x8x128xf32> to vector<8x128xf32>
    %243 = vector.extract_strided_slice %211 {offsets = [5, 0], sizes = [1, 128], strides = [1, 1]} : vector<8x128xf32> to vector<1x128xf32>
    %244 = vector.broadcast %243 : vector<1x128xf32> to vector<8x128xf32>
    %245 = arith.mulf %242, %244 : vector<8x128xf32>
    %246 = arith.addf %240, %245 : vector<8x128xf32>
    %c23 = arith.constant 23 : index
    %c0_95 = arith.constant 0 : index
    %c0_96 = arith.constant 0 : index
    %247 = vector.load %arg1[%c23, %c0_95, %c0_96] : memref<99x8x128xf32, #tpu.memory_space<vmem>>, vector<1x8x128xf32>
    %248 = vector.shape_cast %247 : vector<1x8x128xf32> to vector<8x128xf32>
    %249 = vector.extract_strided_slice %211 {offsets = [6, 0], sizes = [1, 128], strides = [1, 1]} : vector<8x128xf32> to vector<1x128xf32>
    %250 = vector.broadcast %249 : vector<1x128xf32> to vector<8x128xf32>
    %251 = arith.mulf %248, %250 : vector<8x128xf32>
    %252 = arith.addf %246, %251 : vector<8x128xf32>
    %c24 = arith.constant 24 : index
    %c0_97 = arith.constant 0 : index
    %c0_98 = arith.constant 0 : index
    %253 = vector.load %arg1[%c24, %c0_97, %c0_98] : memref<99x8x128xf32, #tpu.memory_space<vmem>>, vector<1x8x128xf32>
    %254 = vector.shape_cast %253 : vector<1x8x128xf32> to vector<8x128xf32>
    %255 = vector.extract_strided_slice %211 {offsets = [7, 0], sizes = [1, 128], strides = [1, 1]} : vector<8x128xf32> to vector<1x128xf32>
    %256 = vector.broadcast %255 : vector<1x128xf32> to vector<8x128xf32>
    %257 = arith.mulf %254, %256 : vector<8x128xf32>
    %258 = arith.addf %252, %257 : vector<8x128xf32>
    %c31 = arith.constant 31 : index
    %c0_99 = arith.constant 0 : index
    %c0_100 = arith.constant 0 : index
    %259 = vector.load %arg1[%c31, %c0_99, %c0_100] : memref<99x8x128xf32, #tpu.memory_space<vmem>>, vector<1x8x128xf32>
    %260 = vector.shape_cast %259 : vector<1x8x128xf32> to vector<8x128xf32>
    %261 = arith.mulf %258, %260 : vector<8x128xf32>
    %c32 = arith.constant 32 : index
    %c0_101 = arith.constant 0 : index
    %c0_102 = arith.constant 0 : index
    %262 = vector.load %arg1[%c32, %c0_101, %c0_102] : memref<99x8x128xf32, #tpu.memory_space<vmem>>, vector<1x8x128xf32>
    %263 = vector.shape_cast %262 : vector<1x8x128xf32> to vector<8x128xf32>
    %264 = arith.addf %261, %263 : vector<8x128xf32>
    %265 = arith.addf %264, %21 : vector<8x128xf32>
    %c33 = arith.constant 33 : index
    %c0_103 = arith.constant 0 : index
    %c0_104 = arith.constant 0 : index
    %266 = vector.load %arg1[%c33, %c0_103, %c0_104] : memref<99x8x128xf32, #tpu.memory_space<vmem>>, vector<1x8x128xf32>
    %267 = vector.shape_cast %266 : vector<1x8x128xf32> to vector<8x128xf32>
    %268 = vector.extract_strided_slice %265 {offsets = [0, 0], sizes = [1, 128], strides = [1, 1]} : vector<8x128xf32> to vector<1x128xf32>
    %269 = vector.broadcast %268 : vector<1x128xf32> to vector<8x128xf32>
    %270 = arith.mulf %267, %269 : vector<8x128xf32>
    %c34 = arith.constant 34 : index
    %c0_105 = arith.constant 0 : index
    %c0_106 = arith.constant 0 : index
    %271 = vector.load %arg1[%c34, %c0_105, %c0_106] : memref<99x8x128xf32, #tpu.memory_space<vmem>>, vector<1x8x128xf32>
    %272 = vector.shape_cast %271 : vector<1x8x128xf32> to vector<8x128xf32>
    %273 = vector.extract_strided_slice %265 {offsets = [1, 0], sizes = [1, 128], strides = [1, 1]} : vector<8x128xf32> to vector<1x128xf32>
    %274 = vector.broadcast %273 : vector<1x128xf32> to vector<8x128xf32>
    %275 = arith.mulf %272, %274 : vector<8x128xf32>
    %276 = arith.addf %270, %275 : vector<8x128xf32>
    %c35 = arith.constant 35 : index
    %c0_107 = arith.constant 0 : index
    %c0_108 = arith.constant 0 : index
    %277 = vector.load %arg1[%c35, %c0_107, %c0_108] : memref<99x8x128xf32, #tpu.memory_space<vmem>>, vector<1x8x128xf32>
    %278 = vector.shape_cast %277 : vector<1x8x128xf32> to vector<8x128xf32>
    %279 = vector.extract_strided_slice %265 {offsets = [2, 0], sizes = [1, 128], strides = [1, 1]} : vector<8x128xf32> to vector<1x128xf32>
    %280 = vector.broadcast %279 : vector<1x128xf32> to vector<8x128xf32>
    %281 = arith.mulf %278, %280 : vector<8x128xf32>
    %282 = arith.addf %276, %281 : vector<8x128xf32>
    %c36 = arith.constant 36 : index
    %c0_109 = arith.constant 0 : index
    %c0_110 = arith.constant 0 : index
    %283 = vector.load %arg1[%c36, %c0_109, %c0_110] : memref<99x8x128xf32, #tpu.memory_space<vmem>>, vector<1x8x128xf32>
    %284 = vector.shape_cast %283 : vector<1x8x128xf32> to vector<8x128xf32>
    %285 = vector.extract_strided_slice %265 {offsets = [3, 0], sizes = [1, 128], strides = [1, 1]} : vector<8x128xf32> to vector<1x128xf32>
    %286 = vector.broadcast %285 : vector<1x128xf32> to vector<8x128xf32>
    %287 = arith.mulf %284, %286 : vector<8x128xf32>
    %288 = arith.addf %282, %287 : vector<8x128xf32>
    %c58 = arith.constant 58 : index
    %c0_111 = arith.constant 0 : index
    %c0_112 = arith.constant 0 : index
    %289 = vector.load %arg1[%c58, %c0_111, %c0_112] : memref<99x8x128xf32, #tpu.memory_space<vmem>>, vector<1x8x128xf32>
    %290 = vector.shape_cast %289 : vector<1x8x128xf32> to vector<8x128xf32>
    %291 = arith.mulf %288, %290 : vector<8x128xf32>
    %c59 = arith.constant 59 : index
    %c0_113 = arith.constant 0 : index
    %c0_114 = arith.constant 0 : index
    %292 = vector.load %arg1[%c59, %c0_113, %c0_114] : memref<99x8x128xf32, #tpu.memory_space<vmem>>, vector<1x8x128xf32>
    %293 = vector.shape_cast %292 : vector<1x8x128xf32> to vector<8x128xf32>
    %294 = arith.addf %291, %293 : vector<8x128xf32>
    %cst_115 = arith.constant 0.000000e+00 : f32
    %295 = vector.broadcast %cst_115 : f32 to vector<8x128xf32>
    %296 = arith.maximumf %294, %295 : vector<8x128xf32>
    %c1_i32_116 = arith.constant 1 : i32
    %297 = tpu.dynamic_rotate %296 by %c1_i32_116 dim 1 : vector<8x128xf32>, i32 -> vector<8x128xf32>
    %cst_117 = arith.constant 0.000000e+00 : f32
    %298 = vector.broadcast %cst_117 : f32 to vector<8x128xf32>
    %299 = arith.select %18, %297, %298 : vector<8x128xi1>, vector<8x128xf32>
    %c127_i32_118 = arith.constant 127 : i32
    %300 = tpu.dynamic_rotate %296 by %c127_i32_118 dim 1 : vector<8x128xf32>, i32 -> vector<8x128xf32>
    %cst_119 = arith.constant 0.000000e+00 : f32
    %301 = vector.broadcast %cst_119 : f32 to vector<8x128xf32>
    %302 = arith.select %20, %300, %301 : vector<8x128xi1>, vector<8x128xf32>
    %c37 = arith.constant 37 : index
    %c0_120 = arith.constant 0 : index
    %c0_121 = arith.constant 0 : index
    %303 = vector.load %arg1[%c37, %c0_120, %c0_121] : memref<99x8x128xf32, #tpu.memory_space<vmem>>, vector<1x8x128xf32>
    %304 = vector.shape_cast %303 : vector<1x8x128xf32> to vector<8x128xf32>
    %305 = arith.mulf %304, %299 : vector<8x128xf32>
    %c38 = arith.constant 38 : index
    %c0_122 = arith.constant 0 : index
    %c0_123 = arith.constant 0 : index
    %306 = vector.load %arg1[%c38, %c0_122, %c0_123] : memref<99x8x128xf32, #tpu.memory_space<vmem>>, vector<1x8x128xf32>
    %307 = vector.shape_cast %306 : vector<1x8x128xf32> to vector<8x128xf32>
    %308 = arith.mulf %307, %296 : vector<8x128xf32>
    %309 = arith.addf %305, %308 : vector<8x128xf32>
    %c39 = arith.constant 39 : index
    %c0_124 = arith.constant 0 : index
    %c0_125 = arith.constant 0 : index
    %310 = vector.load %arg1[%c39, %c0_124, %c0_125] : memref<99x8x128xf32, #tpu.memory_space<vmem>>, vector<1x8x128xf32>
    %311 = vector.shape_cast %310 : vector<1x8x128xf32> to vector<8x128xf32>
    %312 = arith.mulf %311, %302 : vector<8x128xf32>
    %313 = arith.addf %309, %312 : vector<8x128xf32>
    %c60 = arith.constant 60 : index
    %c0_126 = arith.constant 0 : index
    %c0_127 = arith.constant 0 : index
    %314 = vector.load %arg1[%c60, %c0_126, %c0_127] : memref<99x8x128xf32, #tpu.memory_space<vmem>>, vector<1x8x128xf32>
    %315 = vector.shape_cast %314 : vector<1x8x128xf32> to vector<8x128xf32>
    %316 = arith.mulf %313, %315 : vector<8x128xf32>
    %c61 = arith.constant 61 : index
    %c0_128 = arith.constant 0 : index
    %c0_129 = arith.constant 0 : index
    %317 = vector.load %arg1[%c61, %c0_128, %c0_129] : memref<99x8x128xf32, #tpu.memory_space<vmem>>, vector<1x8x128xf32>
    %318 = vector.shape_cast %317 : vector<1x8x128xf32> to vector<8x128xf32>
    %319 = arith.addf %316, %318 : vector<8x128xf32>
    %cst_130 = arith.constant 0.000000e+00 : f32
    %320 = vector.broadcast %cst_130 : f32 to vector<8x128xf32>
    %321 = arith.maximumf %319, %320 : vector<8x128xf32>
    %c1_i32_131 = arith.constant 1 : i32
    %322 = vector.broadcast %c1_i32_131 : i32 to vector<8x128xi32>
    %323 = arith.cmpi sge, %16, %322 : vector<8x128xi32>
    %c1_i32_132 = arith.constant 1 : i32
    %324 = tpu.dynamic_rotate %321 by %c1_i32_132 dim 1 : vector<8x128xf32>, i32 -> vector<8x128xf32>
    %cst_133 = arith.constant 0.000000e+00 : f32
    %325 = vector.broadcast %cst_133 : f32 to vector<8x128xf32>
    %326 = arith.select %323, %324, %325 : vector<8x128xi1>, vector<8x128xf32>
    %327 = arith.addf %321, %326 : vector<8x128xf32>
    %c2_i32_134 = arith.constant 2 : i32
    %328 = vector.broadcast %c2_i32_134 : i32 to vector<8x128xi32>
    %329 = arith.cmpi sge, %16, %328 : vector<8x128xi32>
    %c2_i32_135 = arith.constant 2 : i32
    %330 = tpu.dynamic_rotate %327 by %c2_i32_135 dim 1 : vector<8x128xf32>, i32 -> vector<8x128xf32>
    %cst_136 = arith.constant 0.000000e+00 : f32
    %331 = vector.broadcast %cst_136 : f32 to vector<8x128xf32>
    %332 = arith.select %329, %330, %331 : vector<8x128xi1>, vector<8x128xf32>
    %333 = arith.addf %327, %332 : vector<8x128xf32>
    %c4_i32_137 = arith.constant 4 : i32
    %334 = vector.broadcast %c4_i32_137 : i32 to vector<8x128xi32>
    %335 = arith.cmpi sge, %16, %334 : vector<8x128xi32>
    %c4_i32_138 = arith.constant 4 : i32
    %336 = tpu.dynamic_rotate %333 by %c4_i32_138 dim 1 : vector<8x128xf32>, i32 -> vector<8x128xf32>
    %cst_139 = arith.constant 0.000000e+00 : f32
    %337 = vector.broadcast %cst_139 : f32 to vector<8x128xf32>
    %338 = arith.select %335, %336, %337 : vector<8x128xi1>, vector<8x128xf32>
    %339 = arith.addf %333, %338 : vector<8x128xf32>
    %c8_i32_140 = arith.constant 8 : i32
    %340 = vector.broadcast %c8_i32_140 : i32 to vector<8x128xi32>
    %341 = arith.cmpi sge, %16, %340 : vector<8x128xi32>
    %c8_i32_141 = arith.constant 8 : i32
    %342 = tpu.dynamic_rotate %339 by %c8_i32_141 dim 1 : vector<8x128xf32>, i32 -> vector<8x128xf32>
    %cst_142 = arith.constant 0.000000e+00 : f32
    %343 = vector.broadcast %cst_142 : f32 to vector<8x128xf32>
    %344 = arith.select %341, %342, %343 : vector<8x128xi1>, vector<8x128xf32>
    %345 = arith.addf %339, %344 : vector<8x128xf32>
    %c15_i32_143 = arith.constant 15 : i32
    %346 = vector.broadcast %c15_i32_143 : i32 to vector<8x128xi32>
    %347 = arith.cmpi eq, %16, %346 : vector<8x128xi32>
    %cst_144 = arith.constant 0.000000e+00 : f32
    %348 = vector.broadcast %cst_144 : f32 to vector<8x128xf32>
    %349 = arith.select %347, %345, %348 : vector<8x128xi1>, vector<8x128xf32>
    %c1_i32_145 = arith.constant 1 : i32
    %350 = vector.broadcast %c1_i32_145 : i32 to vector<8x128xi32>
    %351 = arith.addi %16, %350 : vector<8x128xi32>
    %c15_i32_146 = arith.constant 15 : i32
    %352 = vector.broadcast %c15_i32_146 : i32 to vector<8x128xi32>
    %353 = arith.cmpi sle, %351, %352 : vector<8x128xi32>
    %c127_i32_147 = arith.constant 127 : i32
    %354 = tpu.dynamic_rotate %349 by %c127_i32_147 dim 1 : vector<8x128xf32>, i32 -> vector<8x128xf32>
    %cst_148 = arith.constant 0.000000e+00 : f32
    %355 = vector.broadcast %cst_148 : f32 to vector<8x128xf32>
    %356 = arith.select %353, %354, %355 : vector<8x128xi1>, vector<8x128xf32>
    %357 = arith.addf %349, %356 : vector<8x128xf32>
    %c2_i32_149 = arith.constant 2 : i32
    %358 = vector.broadcast %c2_i32_149 : i32 to vector<8x128xi32>
    %359 = arith.addi %16, %358 : vector<8x128xi32>
    %c15_i32_150 = arith.constant 15 : i32
    %360 = vector.broadcast %c15_i32_150 : i32 to vector<8x128xi32>
    %361 = arith.cmpi sle, %359, %360 : vector<8x128xi32>
    %c126_i32_151 = arith.constant 126 : i32
    %362 = tpu.dynamic_rotate %357 by %c126_i32_151 dim 1 : vector<8x128xf32>, i32 -> vector<8x128xf32>
    %cst_152 = arith.constant 0.000000e+00 : f32
    %363 = vector.broadcast %cst_152 : f32 to vector<8x128xf32>
    %364 = arith.select %361, %362, %363 : vector<8x128xi1>, vector<8x128xf32>
    %365 = arith.addf %357, %364 : vector<8x128xf32>
    %c4_i32_153 = arith.constant 4 : i32
    %366 = vector.broadcast %c4_i32_153 : i32 to vector<8x128xi32>
    %367 = arith.addi %16, %366 : vector<8x128xi32>
    %c15_i32_154 = arith.constant 15 : i32
    %368 = vector.broadcast %c15_i32_154 : i32 to vector<8x128xi32>
    %369 = arith.cmpi sle, %367, %368 : vector<8x128xi32>
    %c124_i32_155 = arith.constant 124 : i32
    %370 = tpu.dynamic_rotate %365 by %c124_i32_155 dim 1 : vector<8x128xf32>, i32 -> vector<8x128xf32>
    %cst_156 = arith.constant 0.000000e+00 : f32
    %371 = vector.broadcast %cst_156 : f32 to vector<8x128xf32>
    %372 = arith.select %369, %370, %371 : vector<8x128xi1>, vector<8x128xf32>
    %373 = arith.addf %365, %372 : vector<8x128xf32>
    %c8_i32_157 = arith.constant 8 : i32
    %374 = vector.broadcast %c8_i32_157 : i32 to vector<8x128xi32>
    %375 = arith.addi %16, %374 : vector<8x128xi32>
    %c15_i32_158 = arith.constant 15 : i32
    %376 = vector.broadcast %c15_i32_158 : i32 to vector<8x128xi32>
    %377 = arith.cmpi sle, %375, %376 : vector<8x128xi32>
    %c120_i32_159 = arith.constant 120 : i32
    %378 = tpu.dynamic_rotate %373 by %c120_i32_159 dim 1 : vector<8x128xf32>, i32 -> vector<8x128xf32>
    %cst_160 = arith.constant 0.000000e+00 : f32
    %379 = vector.broadcast %cst_160 : f32 to vector<8x128xf32>
    %380 = arith.select %377, %378, %379 : vector<8x128xi1>, vector<8x128xf32>
    %381 = arith.addf %373, %380 : vector<8x128xf32>
    %cst_161 = arith.constant 6.250000e-02 : f32
    %382 = vector.broadcast %cst_161 : f32 to vector<8x128xf32>
    %383 = arith.mulf %381, %382 : vector<8x128xf32>
    %c40 = arith.constant 40 : index
    %c0_162 = arith.constant 0 : index
    %c0_163 = arith.constant 0 : index
    %384 = vector.load %arg1[%c40, %c0_162, %c0_163] : memref<99x8x128xf32, #tpu.memory_space<vmem>>, vector<1x8x128xf32>
    %385 = vector.shape_cast %384 : vector<1x8x128xf32> to vector<8x128xf32>
    %386 = vector.extract_strided_slice %383 {offsets = [0, 0], sizes = [1, 128], strides = [1, 1]} : vector<8x128xf32> to vector<1x128xf32>
    %387 = vector.broadcast %386 : vector<1x128xf32> to vector<8x128xf32>
    %388 = arith.mulf %385, %387 : vector<8x128xf32>
    %c41 = arith.constant 41 : index
    %c0_164 = arith.constant 0 : index
    %c0_165 = arith.constant 0 : index
    %389 = vector.load %arg1[%c41, %c0_164, %c0_165] : memref<99x8x128xf32, #tpu.memory_space<vmem>>, vector<1x8x128xf32>
    %390 = vector.shape_cast %389 : vector<1x8x128xf32> to vector<8x128xf32>
    %391 = vector.extract_strided_slice %383 {offsets = [1, 0], sizes = [1, 128], strides = [1, 1]} : vector<8x128xf32> to vector<1x128xf32>
    %392 = vector.broadcast %391 : vector<1x128xf32> to vector<8x128xf32>
    %393 = arith.mulf %390, %392 : vector<8x128xf32>
    %394 = arith.addf %388, %393 : vector<8x128xf32>
    %c42 = arith.constant 42 : index
    %c0_166 = arith.constant 0 : index
    %c0_167 = arith.constant 0 : index
    %395 = vector.load %arg1[%c42, %c0_166, %c0_167] : memref<99x8x128xf32, #tpu.memory_space<vmem>>, vector<1x8x128xf32>
    %396 = vector.shape_cast %395 : vector<1x8x128xf32> to vector<8x128xf32>
    %397 = vector.extract_strided_slice %383 {offsets = [2, 0], sizes = [1, 128], strides = [1, 1]} : vector<8x128xf32> to vector<1x128xf32>
    %398 = vector.broadcast %397 : vector<1x128xf32> to vector<8x128xf32>
    %399 = arith.mulf %396, %398 : vector<8x128xf32>
    %400 = arith.addf %394, %399 : vector<8x128xf32>
    %c43 = arith.constant 43 : index
    %c0_168 = arith.constant 0 : index
    %c0_169 = arith.constant 0 : index
    %401 = vector.load %arg1[%c43, %c0_168, %c0_169] : memref<99x8x128xf32, #tpu.memory_space<vmem>>, vector<1x8x128xf32>
    %402 = vector.shape_cast %401 : vector<1x8x128xf32> to vector<8x128xf32>
    %403 = vector.extract_strided_slice %383 {offsets = [3, 0], sizes = [1, 128], strides = [1, 1]} : vector<8x128xf32> to vector<1x128xf32>
    %404 = vector.broadcast %403 : vector<1x128xf32> to vector<8x128xf32>
    %405 = arith.mulf %402, %404 : vector<8x128xf32>
    %406 = arith.addf %400, %405 : vector<8x128xf32>
    %c44 = arith.constant 44 : index
    %c0_170 = arith.constant 0 : index
    %c0_171 = arith.constant 0 : index
    %407 = vector.load %arg1[%c44, %c0_170, %c0_171] : memref<99x8x128xf32, #tpu.memory_space<vmem>>, vector<1x8x128xf32>
    %408 = vector.shape_cast %407 : vector<1x8x128xf32> to vector<8x128xf32>
    %409 = vector.extract_strided_slice %383 {offsets = [4, 0], sizes = [1, 128], strides = [1, 1]} : vector<8x128xf32> to vector<1x128xf32>
    %410 = vector.broadcast %409 : vector<1x128xf32> to vector<8x128xf32>
    %411 = arith.mulf %408, %410 : vector<8x128xf32>
    %412 = arith.addf %406, %411 : vector<8x128xf32>
    %c45 = arith.constant 45 : index
    %c0_172 = arith.constant 0 : index
    %c0_173 = arith.constant 0 : index
    %413 = vector.load %arg1[%c45, %c0_172, %c0_173] : memref<99x8x128xf32, #tpu.memory_space<vmem>>, vector<1x8x128xf32>
    %414 = vector.shape_cast %413 : vector<1x8x128xf32> to vector<8x128xf32>
    %415 = vector.extract_strided_slice %383 {offsets = [5, 0], sizes = [1, 128], strides = [1, 1]} : vector<8x128xf32> to vector<1x128xf32>
    %416 = vector.broadcast %415 : vector<1x128xf32> to vector<8x128xf32>
    %417 = arith.mulf %414, %416 : vector<8x128xf32>
    %418 = arith.addf %412, %417 : vector<8x128xf32>
    %c46 = arith.constant 46 : index
    %c0_174 = arith.constant 0 : index
    %c0_175 = arith.constant 0 : index
    %419 = vector.load %arg1[%c46, %c0_174, %c0_175] : memref<99x8x128xf32, #tpu.memory_space<vmem>>, vector<1x8x128xf32>
    %420 = vector.shape_cast %419 : vector<1x8x128xf32> to vector<8x128xf32>
    %421 = vector.extract_strided_slice %383 {offsets = [6, 0], sizes = [1, 128], strides = [1, 1]} : vector<8x128xf32> to vector<1x128xf32>
    %422 = vector.broadcast %421 : vector<1x128xf32> to vector<8x128xf32>
    %423 = arith.mulf %420, %422 : vector<8x128xf32>
    %424 = arith.addf %418, %423 : vector<8x128xf32>
    %c47 = arith.constant 47 : index
    %c0_176 = arith.constant 0 : index
    %c0_177 = arith.constant 0 : index
    %425 = vector.load %arg1[%c47, %c0_176, %c0_177] : memref<99x8x128xf32, #tpu.memory_space<vmem>>, vector<1x8x128xf32>
    %426 = vector.shape_cast %425 : vector<1x8x128xf32> to vector<8x128xf32>
    %427 = vector.extract_strided_slice %383 {offsets = [7, 0], sizes = [1, 128], strides = [1, 1]} : vector<8x128xf32> to vector<1x128xf32>
    %428 = vector.broadcast %427 : vector<1x128xf32> to vector<8x128xf32>
    %429 = arith.mulf %426, %428 : vector<8x128xf32>
    %430 = arith.addf %424, %429 : vector<8x128xf32>
    %c62 = arith.constant 62 : index
    %c0_178 = arith.constant 0 : index
    %c0_179 = arith.constant 0 : index
    %431 = vector.load %arg1[%c62, %c0_178, %c0_179] : memref<99x8x128xf32, #tpu.memory_space<vmem>>, vector<1x8x128xf32>
    %432 = vector.shape_cast %431 : vector<1x8x128xf32> to vector<8x128xf32>
    %433 = arith.addf %430, %432 : vector<8x128xf32>
    %cst_180 = arith.constant 0.000000e+00 : f32
    %434 = vector.broadcast %cst_180 : f32 to vector<8x128xf32>
    %435 = arith.maximumf %433, %434 : vector<8x128xf32>
    %c48 = arith.constant 48 : index
    %c0_181 = arith.constant 0 : index
    %c0_182 = arith.constant 0 : index
    %436 = vector.load %arg1[%c48, %c0_181, %c0_182] : memref<99x8x128xf32, #tpu.memory_space<vmem>>, vector<1x8x128xf32>
    %437 = vector.shape_cast %436 : vector<1x8x128xf32> to vector<8x128xf32>
    %438 = vector.extract_strided_slice %435 {offsets = [0, 0], sizes = [1, 128], strides = [1, 1]} : vector<8x128xf32> to vector<1x128xf32>
    %439 = vector.broadcast %438 : vector<1x128xf32> to vector<8x128xf32>
    %440 = arith.mulf %437, %439 : vector<8x128xf32>
    %c49 = arith.constant 49 : index
    %c0_183 = arith.constant 0 : index
    %c0_184 = arith.constant 0 : index
    %441 = vector.load %arg1[%c49, %c0_183, %c0_184] : memref<99x8x128xf32, #tpu.memory_space<vmem>>, vector<1x8x128xf32>
    %442 = vector.shape_cast %441 : vector<1x8x128xf32> to vector<8x128xf32>
    %443 = vector.extract_strided_slice %435 {offsets = [1, 0], sizes = [1, 128], strides = [1, 1]} : vector<8x128xf32> to vector<1x128xf32>
    %444 = vector.broadcast %443 : vector<1x128xf32> to vector<8x128xf32>
    %445 = arith.mulf %442, %444 : vector<8x128xf32>
    %446 = arith.addf %440, %445 : vector<8x128xf32>
    %c63 = arith.constant 63 : index
    %c0_185 = arith.constant 0 : index
    %c0_186 = arith.constant 0 : index
    %447 = vector.load %arg1[%c63, %c0_185, %c0_186] : memref<99x8x128xf32, #tpu.memory_space<vmem>>, vector<1x8x128xf32>
    %448 = vector.shape_cast %447 : vector<1x8x128xf32> to vector<8x128xf32>
    %449 = arith.addf %446, %448 : vector<8x128xf32>
    %450 = arith.negf %449 : vector<8x128xf32>
    %451 = math.exp %450 : vector<8x128xf32>
    %cst_187 = arith.constant 1.000000e+00 : f32
    %452 = vector.broadcast %cst_187 : f32 to vector<8x128xf32>
    %453 = arith.addf %452, %451 : vector<8x128xf32>
    %454 = arith.divf %452, %453 : vector<8x128xf32>
    %455 = arith.mulf %321, %454 : vector<8x128xf32>
    %c50 = arith.constant 50 : index
    %c0_188 = arith.constant 0 : index
    %c0_189 = arith.constant 0 : index
    %456 = vector.load %arg1[%c50, %c0_188, %c0_189] : memref<99x8x128xf32, #tpu.memory_space<vmem>>, vector<1x8x128xf32>
    %457 = vector.shape_cast %456 : vector<1x8x128xf32> to vector<8x128xf32>
    %458 = vector.extract_strided_slice %455 {offsets = [0, 0], sizes = [1, 128], strides = [1, 1]} : vector<8x128xf32> to vector<1x128xf32>
    %459 = vector.broadcast %458 : vector<1x128xf32> to vector<8x128xf32>
    %460 = arith.mulf %457, %459 : vector<8x128xf32>
    %c51 = arith.constant 51 : index
    %c0_190 = arith.constant 0 : index
    %c0_191 = arith.constant 0 : index
    %461 = vector.load %arg1[%c51, %c0_190, %c0_191] : memref<99x8x128xf32, #tpu.memory_space<vmem>>, vector<1x8x128xf32>
    %462 = vector.shape_cast %461 : vector<1x8x128xf32> to vector<8x128xf32>
    %463 = vector.extract_strided_slice %455 {offsets = [1, 0], sizes = [1, 128], strides = [1, 1]} : vector<8x128xf32> to vector<1x128xf32>
    %464 = vector.broadcast %463 : vector<1x128xf32> to vector<8x128xf32>
    %465 = arith.mulf %462, %464 : vector<8x128xf32>
    %466 = arith.addf %460, %465 : vector<8x128xf32>
    %c52 = arith.constant 52 : index
    %c0_192 = arith.constant 0 : index
    %c0_193 = arith.constant 0 : index
    %467 = vector.load %arg1[%c52, %c0_192, %c0_193] : memref<99x8x128xf32, #tpu.memory_space<vmem>>, vector<1x8x128xf32>
    %468 = vector.shape_cast %467 : vector<1x8x128xf32> to vector<8x128xf32>
    %469 = vector.extract_strided_slice %455 {offsets = [2, 0], sizes = [1, 128], strides = [1, 1]} : vector<8x128xf32> to vector<1x128xf32>
    %470 = vector.broadcast %469 : vector<1x128xf32> to vector<8x128xf32>
    %471 = arith.mulf %468, %470 : vector<8x128xf32>
    %472 = arith.addf %466, %471 : vector<8x128xf32>
    %c53 = arith.constant 53 : index
    %c0_194 = arith.constant 0 : index
    %c0_195 = arith.constant 0 : index
    %473 = vector.load %arg1[%c53, %c0_194, %c0_195] : memref<99x8x128xf32, #tpu.memory_space<vmem>>, vector<1x8x128xf32>
    %474 = vector.shape_cast %473 : vector<1x8x128xf32> to vector<8x128xf32>
    %475 = vector.extract_strided_slice %455 {offsets = [3, 0], sizes = [1, 128], strides = [1, 1]} : vector<8x128xf32> to vector<1x128xf32>
    %476 = vector.broadcast %475 : vector<1x128xf32> to vector<8x128xf32>
    %477 = arith.mulf %474, %476 : vector<8x128xf32>
    %478 = arith.addf %472, %477 : vector<8x128xf32>
    %c54 = arith.constant 54 : index
    %c0_196 = arith.constant 0 : index
    %c0_197 = arith.constant 0 : index
    %479 = vector.load %arg1[%c54, %c0_196, %c0_197] : memref<99x8x128xf32, #tpu.memory_space<vmem>>, vector<1x8x128xf32>
    %480 = vector.shape_cast %479 : vector<1x8x128xf32> to vector<8x128xf32>
    %481 = vector.extract_strided_slice %455 {offsets = [4, 0], sizes = [1, 128], strides = [1, 1]} : vector<8x128xf32> to vector<1x128xf32>
    %482 = vector.broadcast %481 : vector<1x128xf32> to vector<8x128xf32>
    %483 = arith.mulf %480, %482 : vector<8x128xf32>
    %484 = arith.addf %478, %483 : vector<8x128xf32>
    %c55 = arith.constant 55 : index
    %c0_198 = arith.constant 0 : index
    %c0_199 = arith.constant 0 : index
    %485 = vector.load %arg1[%c55, %c0_198, %c0_199] : memref<99x8x128xf32, #tpu.memory_space<vmem>>, vector<1x8x128xf32>
    %486 = vector.shape_cast %485 : vector<1x8x128xf32> to vector<8x128xf32>
    %487 = vector.extract_strided_slice %455 {offsets = [5, 0], sizes = [1, 128], strides = [1, 1]} : vector<8x128xf32> to vector<1x128xf32>
    %488 = vector.broadcast %487 : vector<1x128xf32> to vector<8x128xf32>
    %489 = arith.mulf %486, %488 : vector<8x128xf32>
    %490 = arith.addf %484, %489 : vector<8x128xf32>
    %c56 = arith.constant 56 : index
    %c0_200 = arith.constant 0 : index
    %c0_201 = arith.constant 0 : index
    %491 = vector.load %arg1[%c56, %c0_200, %c0_201] : memref<99x8x128xf32, #tpu.memory_space<vmem>>, vector<1x8x128xf32>
    %492 = vector.shape_cast %491 : vector<1x8x128xf32> to vector<8x128xf32>
    %493 = vector.extract_strided_slice %455 {offsets = [6, 0], sizes = [1, 128], strides = [1, 1]} : vector<8x128xf32> to vector<1x128xf32>
    %494 = vector.broadcast %493 : vector<1x128xf32> to vector<8x128xf32>
    %495 = arith.mulf %492, %494 : vector<8x128xf32>
    %496 = arith.addf %490, %495 : vector<8x128xf32>
    %c57 = arith.constant 57 : index
    %c0_202 = arith.constant 0 : index
    %c0_203 = arith.constant 0 : index
    %497 = vector.load %arg1[%c57, %c0_202, %c0_203] : memref<99x8x128xf32, #tpu.memory_space<vmem>>, vector<1x8x128xf32>
    %498 = vector.shape_cast %497 : vector<1x8x128xf32> to vector<8x128xf32>
    %499 = vector.extract_strided_slice %455 {offsets = [7, 0], sizes = [1, 128], strides = [1, 1]} : vector<8x128xf32> to vector<1x128xf32>
    %500 = vector.broadcast %499 : vector<1x128xf32> to vector<8x128xf32>
    %501 = arith.mulf %498, %500 : vector<8x128xf32>
    %502 = arith.addf %496, %501 : vector<8x128xf32>
    %c64 = arith.constant 64 : index
    %c0_204 = arith.constant 0 : index
    %c0_205 = arith.constant 0 : index
    %503 = vector.load %arg1[%c64, %c0_204, %c0_205] : memref<99x8x128xf32, #tpu.memory_space<vmem>>, vector<1x8x128xf32>
    %504 = vector.shape_cast %503 : vector<1x8x128xf32> to vector<8x128xf32>
    %505 = arith.mulf %502, %504 : vector<8x128xf32>
    %c65 = arith.constant 65 : index
    %c0_206 = arith.constant 0 : index
    %c0_207 = arith.constant 0 : index
    %506 = vector.load %arg1[%c65, %c0_206, %c0_207] : memref<99x8x128xf32, #tpu.memory_space<vmem>>, vector<1x8x128xf32>
    %507 = vector.shape_cast %506 : vector<1x8x128xf32> to vector<8x128xf32>
    %508 = arith.addf %505, %507 : vector<8x128xf32>
    %509 = arith.addf %508, %265 : vector<8x128xf32>
    %c66 = arith.constant 66 : index
    %c0_208 = arith.constant 0 : index
    %c0_209 = arith.constant 0 : index
    %510 = vector.load %arg1[%c66, %c0_208, %c0_209] : memref<99x8x128xf32, #tpu.memory_space<vmem>>, vector<1x8x128xf32>
    %511 = vector.shape_cast %510 : vector<1x8x128xf32> to vector<8x128xf32>
    %512 = vector.extract_strided_slice %509 {offsets = [0, 0], sizes = [1, 128], strides = [1, 1]} : vector<8x128xf32> to vector<1x128xf32>
    %513 = vector.broadcast %512 : vector<1x128xf32> to vector<8x128xf32>
    %514 = arith.mulf %511, %513 : vector<8x128xf32>
    %c67 = arith.constant 67 : index
    %c0_210 = arith.constant 0 : index
    %c0_211 = arith.constant 0 : index
    %515 = vector.load %arg1[%c67, %c0_210, %c0_211] : memref<99x8x128xf32, #tpu.memory_space<vmem>>, vector<1x8x128xf32>
    %516 = vector.shape_cast %515 : vector<1x8x128xf32> to vector<8x128xf32>
    %517 = vector.extract_strided_slice %509 {offsets = [1, 0], sizes = [1, 128], strides = [1, 1]} : vector<8x128xf32> to vector<1x128xf32>
    %518 = vector.broadcast %517 : vector<1x128xf32> to vector<8x128xf32>
    %519 = arith.mulf %516, %518 : vector<8x128xf32>
    %520 = arith.addf %514, %519 : vector<8x128xf32>
    %c68 = arith.constant 68 : index
    %c0_212 = arith.constant 0 : index
    %c0_213 = arith.constant 0 : index
    %521 = vector.load %arg1[%c68, %c0_212, %c0_213] : memref<99x8x128xf32, #tpu.memory_space<vmem>>, vector<1x8x128xf32>
    %522 = vector.shape_cast %521 : vector<1x8x128xf32> to vector<8x128xf32>
    %523 = vector.extract_strided_slice %509 {offsets = [2, 0], sizes = [1, 128], strides = [1, 1]} : vector<8x128xf32> to vector<1x128xf32>
    %524 = vector.broadcast %523 : vector<1x128xf32> to vector<8x128xf32>
    %525 = arith.mulf %522, %524 : vector<8x128xf32>
    %526 = arith.addf %520, %525 : vector<8x128xf32>
    %c69 = arith.constant 69 : index
    %c0_214 = arith.constant 0 : index
    %c0_215 = arith.constant 0 : index
    %527 = vector.load %arg1[%c69, %c0_214, %c0_215] : memref<99x8x128xf32, #tpu.memory_space<vmem>>, vector<1x8x128xf32>
    %528 = vector.shape_cast %527 : vector<1x8x128xf32> to vector<8x128xf32>
    %529 = vector.extract_strided_slice %509 {offsets = [3, 0], sizes = [1, 128], strides = [1, 1]} : vector<8x128xf32> to vector<1x128xf32>
    %530 = vector.broadcast %529 : vector<1x128xf32> to vector<8x128xf32>
    %531 = arith.mulf %528, %530 : vector<8x128xf32>
    %532 = arith.addf %526, %531 : vector<8x128xf32>
    %c91 = arith.constant 91 : index
    %c0_216 = arith.constant 0 : index
    %c0_217 = arith.constant 0 : index
    %533 = vector.load %arg1[%c91, %c0_216, %c0_217] : memref<99x8x128xf32, #tpu.memory_space<vmem>>, vector<1x8x128xf32>
    %534 = vector.shape_cast %533 : vector<1x8x128xf32> to vector<8x128xf32>
    %535 = arith.mulf %532, %534 : vector<8x128xf32>
    %c92 = arith.constant 92 : index
    %c0_218 = arith.constant 0 : index
    %c0_219 = arith.constant 0 : index
    %536 = vector.load %arg1[%c92, %c0_218, %c0_219] : memref<99x8x128xf32, #tpu.memory_space<vmem>>, vector<1x8x128xf32>
    %537 = vector.shape_cast %536 : vector<1x8x128xf32> to vector<8x128xf32>
    %538 = arith.addf %535, %537 : vector<8x128xf32>
    %cst_220 = arith.constant 0.000000e+00 : f32
    %539 = vector.broadcast %cst_220 : f32 to vector<8x128xf32>
    %540 = arith.maximumf %538, %539 : vector<8x128xf32>
    %c1_i32_221 = arith.constant 1 : i32
    %541 = tpu.dynamic_rotate %540 by %c1_i32_221 dim 1 : vector<8x128xf32>, i32 -> vector<8x128xf32>
    %cst_222 = arith.constant 0.000000e+00 : f32
    %542 = vector.broadcast %cst_222 : f32 to vector<8x128xf32>
    %543 = arith.select %18, %541, %542 : vector<8x128xi1>, vector<8x128xf32>
    %c127_i32_223 = arith.constant 127 : i32
    %544 = tpu.dynamic_rotate %540 by %c127_i32_223 dim 1 : vector<8x128xf32>, i32 -> vector<8x128xf32>
    %cst_224 = arith.constant 0.000000e+00 : f32
    %545 = vector.broadcast %cst_224 : f32 to vector<8x128xf32>
    %546 = arith.select %20, %544, %545 : vector<8x128xi1>, vector<8x128xf32>
    %c70 = arith.constant 70 : index
    %c0_225 = arith.constant 0 : index
    %c0_226 = arith.constant 0 : index
    %547 = vector.load %arg1[%c70, %c0_225, %c0_226] : memref<99x8x128xf32, #tpu.memory_space<vmem>>, vector<1x8x128xf32>
    %548 = vector.shape_cast %547 : vector<1x8x128xf32> to vector<8x128xf32>
    %549 = arith.mulf %548, %543 : vector<8x128xf32>
    %c71 = arith.constant 71 : index
    %c0_227 = arith.constant 0 : index
    %c0_228 = arith.constant 0 : index
    %550 = vector.load %arg1[%c71, %c0_227, %c0_228] : memref<99x8x128xf32, #tpu.memory_space<vmem>>, vector<1x8x128xf32>
    %551 = vector.shape_cast %550 : vector<1x8x128xf32> to vector<8x128xf32>
    %552 = arith.mulf %551, %540 : vector<8x128xf32>
    %553 = arith.addf %549, %552 : vector<8x128xf32>
    %c72 = arith.constant 72 : index
    %c0_229 = arith.constant 0 : index
    %c0_230 = arith.constant 0 : index
    %554 = vector.load %arg1[%c72, %c0_229, %c0_230] : memref<99x8x128xf32, #tpu.memory_space<vmem>>, vector<1x8x128xf32>
    %555 = vector.shape_cast %554 : vector<1x8x128xf32> to vector<8x128xf32>
    %556 = arith.mulf %555, %546 : vector<8x128xf32>
    %557 = arith.addf %553, %556 : vector<8x128xf32>
    %c93 = arith.constant 93 : index
    %c0_231 = arith.constant 0 : index
    %c0_232 = arith.constant 0 : index
    %558 = vector.load %arg1[%c93, %c0_231, %c0_232] : memref<99x8x128xf32, #tpu.memory_space<vmem>>, vector<1x8x128xf32>
    %559 = vector.shape_cast %558 : vector<1x8x128xf32> to vector<8x128xf32>
    %560 = arith.mulf %557, %559 : vector<8x128xf32>
    %c94 = arith.constant 94 : index
    %c0_233 = arith.constant 0 : index
    %c0_234 = arith.constant 0 : index
    %561 = vector.load %arg1[%c94, %c0_233, %c0_234] : memref<99x8x128xf32, #tpu.memory_space<vmem>>, vector<1x8x128xf32>
    %562 = vector.shape_cast %561 : vector<1x8x128xf32> to vector<8x128xf32>
    %563 = arith.addf %560, %562 : vector<8x128xf32>
    %cst_235 = arith.constant 0.000000e+00 : f32
    %564 = vector.broadcast %cst_235 : f32 to vector<8x128xf32>
    %565 = arith.maximumf %563, %564 : vector<8x128xf32>
    %c1_i32_236 = arith.constant 1 : i32
    %566 = vector.broadcast %c1_i32_236 : i32 to vector<8x128xi32>
    %567 = arith.cmpi sge, %16, %566 : vector<8x128xi32>
    %c1_i32_237 = arith.constant 1 : i32
    %568 = tpu.dynamic_rotate %565 by %c1_i32_237 dim 1 : vector<8x128xf32>, i32 -> vector<8x128xf32>
    %cst_238 = arith.constant 0.000000e+00 : f32
    %569 = vector.broadcast %cst_238 : f32 to vector<8x128xf32>
    %570 = arith.select %567, %568, %569 : vector<8x128xi1>, vector<8x128xf32>
    %571 = arith.addf %565, %570 : vector<8x128xf32>
    %c2_i32_239 = arith.constant 2 : i32
    %572 = vector.broadcast %c2_i32_239 : i32 to vector<8x128xi32>
    %573 = arith.cmpi sge, %16, %572 : vector<8x128xi32>
    %c2_i32_240 = arith.constant 2 : i32
    %574 = tpu.dynamic_rotate %571 by %c2_i32_240 dim 1 : vector<8x128xf32>, i32 -> vector<8x128xf32>
    %cst_241 = arith.constant 0.000000e+00 : f32
    %575 = vector.broadcast %cst_241 : f32 to vector<8x128xf32>
    %576 = arith.select %573, %574, %575 : vector<8x128xi1>, vector<8x128xf32>
    %577 = arith.addf %571, %576 : vector<8x128xf32>
    %c4_i32_242 = arith.constant 4 : i32
    %578 = vector.broadcast %c4_i32_242 : i32 to vector<8x128xi32>
    %579 = arith.cmpi sge, %16, %578 : vector<8x128xi32>
    %c4_i32_243 = arith.constant 4 : i32
    %580 = tpu.dynamic_rotate %577 by %c4_i32_243 dim 1 : vector<8x128xf32>, i32 -> vector<8x128xf32>
    %cst_244 = arith.constant 0.000000e+00 : f32
    %581 = vector.broadcast %cst_244 : f32 to vector<8x128xf32>
    %582 = arith.select %579, %580, %581 : vector<8x128xi1>, vector<8x128xf32>
    %583 = arith.addf %577, %582 : vector<8x128xf32>
    %c8_i32_245 = arith.constant 8 : i32
    %584 = vector.broadcast %c8_i32_245 : i32 to vector<8x128xi32>
    %585 = arith.cmpi sge, %16, %584 : vector<8x128xi32>
    %c8_i32_246 = arith.constant 8 : i32
    %586 = tpu.dynamic_rotate %583 by %c8_i32_246 dim 1 : vector<8x128xf32>, i32 -> vector<8x128xf32>
    %cst_247 = arith.constant 0.000000e+00 : f32
    %587 = vector.broadcast %cst_247 : f32 to vector<8x128xf32>
    %588 = arith.select %585, %586, %587 : vector<8x128xi1>, vector<8x128xf32>
    %589 = arith.addf %583, %588 : vector<8x128xf32>
    %c15_i32_248 = arith.constant 15 : i32
    %590 = vector.broadcast %c15_i32_248 : i32 to vector<8x128xi32>
    %591 = arith.cmpi eq, %16, %590 : vector<8x128xi32>
    %cst_249 = arith.constant 0.000000e+00 : f32
    %592 = vector.broadcast %cst_249 : f32 to vector<8x128xf32>
    %593 = arith.select %591, %589, %592 : vector<8x128xi1>, vector<8x128xf32>
    %c1_i32_250 = arith.constant 1 : i32
    %594 = vector.broadcast %c1_i32_250 : i32 to vector<8x128xi32>
    %595 = arith.addi %16, %594 : vector<8x128xi32>
    %c15_i32_251 = arith.constant 15 : i32
    %596 = vector.broadcast %c15_i32_251 : i32 to vector<8x128xi32>
    %597 = arith.cmpi sle, %595, %596 : vector<8x128xi32>
    %c127_i32_252 = arith.constant 127 : i32
    %598 = tpu.dynamic_rotate %593 by %c127_i32_252 dim 1 : vector<8x128xf32>, i32 -> vector<8x128xf32>
    %cst_253 = arith.constant 0.000000e+00 : f32
    %599 = vector.broadcast %cst_253 : f32 to vector<8x128xf32>
    %600 = arith.select %597, %598, %599 : vector<8x128xi1>, vector<8x128xf32>
    %601 = arith.addf %593, %600 : vector<8x128xf32>
    %c2_i32_254 = arith.constant 2 : i32
    %602 = vector.broadcast %c2_i32_254 : i32 to vector<8x128xi32>
    %603 = arith.addi %16, %602 : vector<8x128xi32>
    %c15_i32_255 = arith.constant 15 : i32
    %604 = vector.broadcast %c15_i32_255 : i32 to vector<8x128xi32>
    %605 = arith.cmpi sle, %603, %604 : vector<8x128xi32>
    %c126_i32_256 = arith.constant 126 : i32
    %606 = tpu.dynamic_rotate %601 by %c126_i32_256 dim 1 : vector<8x128xf32>, i32 -> vector<8x128xf32>
    %cst_257 = arith.constant 0.000000e+00 : f32
    %607 = vector.broadcast %cst_257 : f32 to vector<8x128xf32>
    %608 = arith.select %605, %606, %607 : vector<8x128xi1>, vector<8x128xf32>
    %609 = arith.addf %601, %608 : vector<8x128xf32>
    %c4_i32_258 = arith.constant 4 : i32
    %610 = vector.broadcast %c4_i32_258 : i32 to vector<8x128xi32>
    %611 = arith.addi %16, %610 : vector<8x128xi32>
    %c15_i32_259 = arith.constant 15 : i32
    %612 = vector.broadcast %c15_i32_259 : i32 to vector<8x128xi32>
    %613 = arith.cmpi sle, %611, %612 : vector<8x128xi32>
    %c124_i32_260 = arith.constant 124 : i32
    %614 = tpu.dynamic_rotate %609 by %c124_i32_260 dim 1 : vector<8x128xf32>, i32 -> vector<8x128xf32>
    %cst_261 = arith.constant 0.000000e+00 : f32
    %615 = vector.broadcast %cst_261 : f32 to vector<8x128xf32>
    %616 = arith.select %613, %614, %615 : vector<8x128xi1>, vector<8x128xf32>
    %617 = arith.addf %609, %616 : vector<8x128xf32>
    %c8_i32_262 = arith.constant 8 : i32
    %618 = vector.broadcast %c8_i32_262 : i32 to vector<8x128xi32>
    %619 = arith.addi %16, %618 : vector<8x128xi32>
    %c15_i32_263 = arith.constant 15 : i32
    %620 = vector.broadcast %c15_i32_263 : i32 to vector<8x128xi32>
    %621 = arith.cmpi sle, %619, %620 : vector<8x128xi32>
    %c120_i32_264 = arith.constant 120 : i32
    %622 = tpu.dynamic_rotate %617 by %c120_i32_264 dim 1 : vector<8x128xf32>, i32 -> vector<8x128xf32>
    %cst_265 = arith.constant 0.000000e+00 : f32
    %623 = vector.broadcast %cst_265 : f32 to vector<8x128xf32>
    %624 = arith.select %621, %622, %623 : vector<8x128xi1>, vector<8x128xf32>
    %625 = arith.addf %617, %624 : vector<8x128xf32>
    %cst_266 = arith.constant 6.250000e-02 : f32
    %626 = vector.broadcast %cst_266 : f32 to vector<8x128xf32>
    %627 = arith.mulf %625, %626 : vector<8x128xf32>
    %c73 = arith.constant 73 : index
    %c0_267 = arith.constant 0 : index
    %c0_268 = arith.constant 0 : index
    %628 = vector.load %arg1[%c73, %c0_267, %c0_268] : memref<99x8x128xf32, #tpu.memory_space<vmem>>, vector<1x8x128xf32>
    %629 = vector.shape_cast %628 : vector<1x8x128xf32> to vector<8x128xf32>
    %630 = vector.extract_strided_slice %627 {offsets = [0, 0], sizes = [1, 128], strides = [1, 1]} : vector<8x128xf32> to vector<1x128xf32>
    %631 = vector.broadcast %630 : vector<1x128xf32> to vector<8x128xf32>
    %632 = arith.mulf %629, %631 : vector<8x128xf32>
    %c74 = arith.constant 74 : index
    %c0_269 = arith.constant 0 : index
    %c0_270 = arith.constant 0 : index
    %633 = vector.load %arg1[%c74, %c0_269, %c0_270] : memref<99x8x128xf32, #tpu.memory_space<vmem>>, vector<1x8x128xf32>
    %634 = vector.shape_cast %633 : vector<1x8x128xf32> to vector<8x128xf32>
    %635 = vector.extract_strided_slice %627 {offsets = [1, 0], sizes = [1, 128], strides = [1, 1]} : vector<8x128xf32> to vector<1x128xf32>
    %636 = vector.broadcast %635 : vector<1x128xf32> to vector<8x128xf32>
    %637 = arith.mulf %634, %636 : vector<8x128xf32>
    %638 = arith.addf %632, %637 : vector<8x128xf32>
    %c75 = arith.constant 75 : index
    %c0_271 = arith.constant 0 : index
    %c0_272 = arith.constant 0 : index
    %639 = vector.load %arg1[%c75, %c0_271, %c0_272] : memref<99x8x128xf32, #tpu.memory_space<vmem>>, vector<1x8x128xf32>
    %640 = vector.shape_cast %639 : vector<1x8x128xf32> to vector<8x128xf32>
    %641 = vector.extract_strided_slice %627 {offsets = [2, 0], sizes = [1, 128], strides = [1, 1]} : vector<8x128xf32> to vector<1x128xf32>
    %642 = vector.broadcast %641 : vector<1x128xf32> to vector<8x128xf32>
    %643 = arith.mulf %640, %642 : vector<8x128xf32>
    %644 = arith.addf %638, %643 : vector<8x128xf32>
    %c76 = arith.constant 76 : index
    %c0_273 = arith.constant 0 : index
    %c0_274 = arith.constant 0 : index
    %645 = vector.load %arg1[%c76, %c0_273, %c0_274] : memref<99x8x128xf32, #tpu.memory_space<vmem>>, vector<1x8x128xf32>
    %646 = vector.shape_cast %645 : vector<1x8x128xf32> to vector<8x128xf32>
    %647 = vector.extract_strided_slice %627 {offsets = [3, 0], sizes = [1, 128], strides = [1, 1]} : vector<8x128xf32> to vector<1x128xf32>
    %648 = vector.broadcast %647 : vector<1x128xf32> to vector<8x128xf32>
    %649 = arith.mulf %646, %648 : vector<8x128xf32>
    %650 = arith.addf %644, %649 : vector<8x128xf32>
    %c77 = arith.constant 77 : index
    %c0_275 = arith.constant 0 : index
    %c0_276 = arith.constant 0 : index
    %651 = vector.load %arg1[%c77, %c0_275, %c0_276] : memref<99x8x128xf32, #tpu.memory_space<vmem>>, vector<1x8x128xf32>
    %652 = vector.shape_cast %651 : vector<1x8x128xf32> to vector<8x128xf32>
    %653 = vector.extract_strided_slice %627 {offsets = [4, 0], sizes = [1, 128], strides = [1, 1]} : vector<8x128xf32> to vector<1x128xf32>
    %654 = vector.broadcast %653 : vector<1x128xf32> to vector<8x128xf32>
    %655 = arith.mulf %652, %654 : vector<8x128xf32>
    %656 = arith.addf %650, %655 : vector<8x128xf32>
    %c78 = arith.constant 78 : index
    %c0_277 = arith.constant 0 : index
    %c0_278 = arith.constant 0 : index
    %657 = vector.load %arg1[%c78, %c0_277, %c0_278] : memref<99x8x128xf32, #tpu.memory_space<vmem>>, vector<1x8x128xf32>
    %658 = vector.shape_cast %657 : vector<1x8x128xf32> to vector<8x128xf32>
    %659 = vector.extract_strided_slice %627 {offsets = [5, 0], sizes = [1, 128], strides = [1, 1]} : vector<8x128xf32> to vector<1x128xf32>
    %660 = vector.broadcast %659 : vector<1x128xf32> to vector<8x128xf32>
    %661 = arith.mulf %658, %660 : vector<8x128xf32>
    %662 = arith.addf %656, %661 : vector<8x128xf32>
    %c79 = arith.constant 79 : index
    %c0_279 = arith.constant 0 : index
    %c0_280 = arith.constant 0 : index
    %663 = vector.load %arg1[%c79, %c0_279, %c0_280] : memref<99x8x128xf32, #tpu.memory_space<vmem>>, vector<1x8x128xf32>
    %664 = vector.shape_cast %663 : vector<1x8x128xf32> to vector<8x128xf32>
    %665 = vector.extract_strided_slice %627 {offsets = [6, 0], sizes = [1, 128], strides = [1, 1]} : vector<8x128xf32> to vector<1x128xf32>
    %666 = vector.broadcast %665 : vector<1x128xf32> to vector<8x128xf32>
    %667 = arith.mulf %664, %666 : vector<8x128xf32>
    %668 = arith.addf %662, %667 : vector<8x128xf32>
    %c80 = arith.constant 80 : index
    %c0_281 = arith.constant 0 : index
    %c0_282 = arith.constant 0 : index
    %669 = vector.load %arg1[%c80, %c0_281, %c0_282] : memref<99x8x128xf32, #tpu.memory_space<vmem>>, vector<1x8x128xf32>
    %670 = vector.shape_cast %669 : vector<1x8x128xf32> to vector<8x128xf32>
    %671 = vector.extract_strided_slice %627 {offsets = [7, 0], sizes = [1, 128], strides = [1, 1]} : vector<8x128xf32> to vector<1x128xf32>
    %672 = vector.broadcast %671 : vector<1x128xf32> to vector<8x128xf32>
    %673 = arith.mulf %670, %672 : vector<8x128xf32>
    %674 = arith.addf %668, %673 : vector<8x128xf32>
    %c95 = arith.constant 95 : index
    %c0_283 = arith.constant 0 : index
    %c0_284 = arith.constant 0 : index
    %675 = vector.load %arg1[%c95, %c0_283, %c0_284] : memref<99x8x128xf32, #tpu.memory_space<vmem>>, vector<1x8x128xf32>
    %676 = vector.shape_cast %675 : vector<1x8x128xf32> to vector<8x128xf32>
    %677 = arith.addf %674, %676 : vector<8x128xf32>
    %cst_285 = arith.constant 0.000000e+00 : f32
    %678 = vector.broadcast %cst_285 : f32 to vector<8x128xf32>
    %679 = arith.maximumf %677, %678 : vector<8x128xf32>
    %c81 = arith.constant 81 : index
    %c0_286 = arith.constant 0 : index
    %c0_287 = arith.constant 0 : index
    %680 = vector.load %arg1[%c81, %c0_286, %c0_287] : memref<99x8x128xf32, #tpu.memory_space<vmem>>, vector<1x8x128xf32>
    %681 = vector.shape_cast %680 : vector<1x8x128xf32> to vector<8x128xf32>
    %682 = vector.extract_strided_slice %679 {offsets = [0, 0], sizes = [1, 128], strides = [1, 1]} : vector<8x128xf32> to vector<1x128xf32>
    %683 = vector.broadcast %682 : vector<1x128xf32> to vector<8x128xf32>
    %684 = arith.mulf %681, %683 : vector<8x128xf32>
    %c82 = arith.constant 82 : index
    %c0_288 = arith.constant 0 : index
    %c0_289 = arith.constant 0 : index
    %685 = vector.load %arg1[%c82, %c0_288, %c0_289] : memref<99x8x128xf32, #tpu.memory_space<vmem>>, vector<1x8x128xf32>
    %686 = vector.shape_cast %685 : vector<1x8x128xf32> to vector<8x128xf32>
    %687 = vector.extract_strided_slice %679 {offsets = [1, 0], sizes = [1, 128], strides = [1, 1]} : vector<8x128xf32> to vector<1x128xf32>
    %688 = vector.broadcast %687 : vector<1x128xf32> to vector<8x128xf32>
    %689 = arith.mulf %686, %688 : vector<8x128xf32>
    %690 = arith.addf %684, %689 : vector<8x128xf32>
    %c96 = arith.constant 96 : index
    %c0_290 = arith.constant 0 : index
    %c0_291 = arith.constant 0 : index
    %691 = vector.load %arg1[%c96, %c0_290, %c0_291] : memref<99x8x128xf32, #tpu.memory_space<vmem>>, vector<1x8x128xf32>
    %692 = vector.shape_cast %691 : vector<1x8x128xf32> to vector<8x128xf32>
    %693 = arith.addf %690, %692 : vector<8x128xf32>
    %694 = arith.negf %693 : vector<8x128xf32>
    %695 = math.exp %694 : vector<8x128xf32>
    %cst_292 = arith.constant 1.000000e+00 : f32
    %696 = vector.broadcast %cst_292 : f32 to vector<8x128xf32>
    %697 = arith.addf %696, %695 : vector<8x128xf32>
    %698 = arith.divf %696, %697 : vector<8x128xf32>
    %699 = arith.mulf %565, %698 : vector<8x128xf32>
    %c83 = arith.constant 83 : index
    %c0_293 = arith.constant 0 : index
    %c0_294 = arith.constant 0 : index
    %700 = vector.load %arg1[%c83, %c0_293, %c0_294] : memref<99x8x128xf32, #tpu.memory_space<vmem>>, vector<1x8x128xf32>
    %701 = vector.shape_cast %700 : vector<1x8x128xf32> to vector<8x128xf32>
    %702 = vector.extract_strided_slice %699 {offsets = [0, 0], sizes = [1, 128], strides = [1, 1]} : vector<8x128xf32> to vector<1x128xf32>
    %703 = vector.broadcast %702 : vector<1x128xf32> to vector<8x128xf32>
    %704 = arith.mulf %701, %703 : vector<8x128xf32>
    %c84 = arith.constant 84 : index
    %c0_295 = arith.constant 0 : index
    %c0_296 = arith.constant 0 : index
    %705 = vector.load %arg1[%c84, %c0_295, %c0_296] : memref<99x8x128xf32, #tpu.memory_space<vmem>>, vector<1x8x128xf32>
    %706 = vector.shape_cast %705 : vector<1x8x128xf32> to vector<8x128xf32>
    %707 = vector.extract_strided_slice %699 {offsets = [1, 0], sizes = [1, 128], strides = [1, 1]} : vector<8x128xf32> to vector<1x128xf32>
    %708 = vector.broadcast %707 : vector<1x128xf32> to vector<8x128xf32>
    %709 = arith.mulf %706, %708 : vector<8x128xf32>
    %710 = arith.addf %704, %709 : vector<8x128xf32>
    %c85 = arith.constant 85 : index
    %c0_297 = arith.constant 0 : index
    %c0_298 = arith.constant 0 : index
    %711 = vector.load %arg1[%c85, %c0_297, %c0_298] : memref<99x8x128xf32, #tpu.memory_space<vmem>>, vector<1x8x128xf32>
    %712 = vector.shape_cast %711 : vector<1x8x128xf32> to vector<8x128xf32>
    %713 = vector.extract_strided_slice %699 {offsets = [2, 0], sizes = [1, 128], strides = [1, 1]} : vector<8x128xf32> to vector<1x128xf32>
    %714 = vector.broadcast %713 : vector<1x128xf32> to vector<8x128xf32>
    %715 = arith.mulf %712, %714 : vector<8x128xf32>
    %716 = arith.addf %710, %715 : vector<8x128xf32>
    %c86 = arith.constant 86 : index
    %c0_299 = arith.constant 0 : index
    %c0_300 = arith.constant 0 : index
    %717 = vector.load %arg1[%c86, %c0_299, %c0_300] : memref<99x8x128xf32, #tpu.memory_space<vmem>>, vector<1x8x128xf32>
    %718 = vector.shape_cast %717 : vector<1x8x128xf32> to vector<8x128xf32>
    %719 = vector.extract_strided_slice %699 {offsets = [3, 0], sizes = [1, 128], strides = [1, 1]} : vector<8x128xf32> to vector<1x128xf32>
    %720 = vector.broadcast %719 : vector<1x128xf32> to vector<8x128xf32>
    %721 = arith.mulf %718, %720 : vector<8x128xf32>
    %722 = arith.addf %716, %721 : vector<8x128xf32>
    %c87 = arith.constant 87 : index
    %c0_301 = arith.constant 0 : index
    %c0_302 = arith.constant 0 : index
    %723 = vector.load %arg1[%c87, %c0_301, %c0_302] : memref<99x8x128xf32, #tpu.memory_space<vmem>>, vector<1x8x128xf32>
    %724 = vector.shape_cast %723 : vector<1x8x128xf32> to vector<8x128xf32>
    %725 = vector.extract_strided_slice %699 {offsets = [4, 0], sizes = [1, 128], strides = [1, 1]} : vector<8x128xf32> to vector<1x128xf32>
    %726 = vector.broadcast %725 : vector<1x128xf32> to vector<8x128xf32>
    %727 = arith.mulf %724, %726 : vector<8x128xf32>
    %728 = arith.addf %722, %727 : vector<8x128xf32>
    %c88 = arith.constant 88 : index
    %c0_303 = arith.constant 0 : index
    %c0_304 = arith.constant 0 : index
    %729 = vector.load %arg1[%c88, %c0_303, %c0_304] : memref<99x8x128xf32, #tpu.memory_space<vmem>>, vector<1x8x128xf32>
    %730 = vector.shape_cast %729 : vector<1x8x128xf32> to vector<8x128xf32>
    %731 = vector.extract_strided_slice %699 {offsets = [5, 0], sizes = [1, 128], strides = [1, 1]} : vector<8x128xf32> to vector<1x128xf32>
    %732 = vector.broadcast %731 : vector<1x128xf32> to vector<8x128xf32>
    %733 = arith.mulf %730, %732 : vector<8x128xf32>
    %734 = arith.addf %728, %733 : vector<8x128xf32>
    %c89 = arith.constant 89 : index
    %c0_305 = arith.constant 0 : index
    %c0_306 = arith.constant 0 : index
    %735 = vector.load %arg1[%c89, %c0_305, %c0_306] : memref<99x8x128xf32, #tpu.memory_space<vmem>>, vector<1x8x128xf32>
    %736 = vector.shape_cast %735 : vector<1x8x128xf32> to vector<8x128xf32>
    %737 = vector.extract_strided_slice %699 {offsets = [6, 0], sizes = [1, 128], strides = [1, 1]} : vector<8x128xf32> to vector<1x128xf32>
    %738 = vector.broadcast %737 : vector<1x128xf32> to vector<8x128xf32>
    %739 = arith.mulf %736, %738 : vector<8x128xf32>
    %740 = arith.addf %734, %739 : vector<8x128xf32>
    %c90 = arith.constant 90 : index
    %c0_307 = arith.constant 0 : index
    %c0_308 = arith.constant 0 : index
    %741 = vector.load %arg1[%c90, %c0_307, %c0_308] : memref<99x8x128xf32, #tpu.memory_space<vmem>>, vector<1x8x128xf32>
    %742 = vector.shape_cast %741 : vector<1x8x128xf32> to vector<8x128xf32>
    %743 = vector.extract_strided_slice %699 {offsets = [7, 0], sizes = [1, 128], strides = [1, 1]} : vector<8x128xf32> to vector<1x128xf32>
    %744 = vector.broadcast %743 : vector<1x128xf32> to vector<8x128xf32>
    %745 = arith.mulf %742, %744 : vector<8x128xf32>
    %746 = arith.addf %740, %745 : vector<8x128xf32>
    %c97 = arith.constant 97 : index
    %c0_309 = arith.constant 0 : index
    %c0_310 = arith.constant 0 : index
    %747 = vector.load %arg1[%c97, %c0_309, %c0_310] : memref<99x8x128xf32, #tpu.memory_space<vmem>>, vector<1x8x128xf32>
    %748 = vector.shape_cast %747 : vector<1x8x128xf32> to vector<8x128xf32>
    %749 = arith.mulf %746, %748 : vector<8x128xf32>
    %c98 = arith.constant 98 : index
    %c0_311 = arith.constant 0 : index
    %c0_312 = arith.constant 0 : index
    %750 = vector.load %arg1[%c98, %c0_311, %c0_312] : memref<99x8x128xf32, #tpu.memory_space<vmem>>, vector<1x8x128xf32>
    %751 = vector.shape_cast %750 : vector<1x8x128xf32> to vector<8x128xf32>
    %752 = arith.addf %749, %751 : vector<8x128xf32>
    %753 = arith.addf %752, %509 : vector<8x128xf32>
    %c0_313 = arith.constant 0 : index
    %c0_314 = arith.constant 0 : index
    %754 = vector.load %arg2[%c0_313, %c0_314] : memref<8x128xf32, #tpu.memory_space<vmem>>, vector<8x128xf32>
    tpu.vector_store %arg2[%c0_313, %c0_314], %753 {strides = array<i32>} : memref<8x128xf32, #tpu.memory_space<vmem>>, vector<8x128xf32>,
    return
  }
}

</mosaic_0001>

<bundles_post_ra>
// kernel: mbconv_stack.1
= control target key start
LH: loop header
LB: loop body
LE: loop exit
PB: predicated region body
PF: predicated region fallthrough
CT: control target
= control target key end

     0   :  { %7 = vsyncpa [#allocation3], 0  ;;  %s728_s12 = smov [#allocation2]   ;;  %s729_s14 = smov 128   ;;  %s920_s0 = inlined_call_operand.vmem [shape: f32[8,128], index: 0, kind: input, shape index: {}]   ;;  %s921_s1 = inlined_call_operand.hbm [shape: f32[99,8,128], index: 1, kind: input, shape index: {}]   ;;  %s922_s2 = inlined_call_operand.vmem [shape: f32[8,128], index: 2, kind: output, shape index: {}]  }
   0x1   :  { %s14_s11 = sshll.u32 %s921_s1, 4  ;;  %s16_s13 = sshll.u32 %s728_s12, 4  ;;  %s15_s11 = int_to_ptr.hbm [resolvable:$true] %s14_s11  ;;  %s17_s13 = int_to_ptr.vmem [resolvable:$true] %s16_s13 }
   0x2   :  { %s730_s15 = smov 8  }
   0x3   :  { %22 = dma.hbm_to_vmem [thread:$0]  %s15_s11, 12672, %s17_s13, [#allocation3], %s729_s14, %s729_s14, %s730_s15  }
   0x4   :  { %726 = dma.done.wait [#allocation3], 12672  }
   0x5   :  { %727 = vsyncadd [#allocation3], 4294954624  ;;  %v760_v0 = vld [vmem:[%s920_s0] sm:$0xff]  ;;  %v48_v2 = vld [vmem:[#allocation2 + $0x8] sm:$0xff]  ;;  %s731_s0 = smov 1   ;;  %s732_s1 = smov 127   ;;  %v27_v21 = vlaneseq }
   0x6   :  { %v44_v1 = vld [vmem:[#allocation2] sm:$0xff]  ;;  %v45_v3 = vperm.slane %v760_v0, 0  ;;  %v49_v4 = vperm.slane %v760_v0, 1  ;;  %v53_v5 = vld [vmem:[#allocation2 + $0x10] sm:$0xff]  ;;  %v54_v6 = vperm.slane %v760_v0, 2  ;;  %v59_v7 = vperm.slane %v760_v0, 3 }
   0x7   :  { %v58_v8 = vld [vmem:[#allocation2 + $0x18] sm:$0xff]  ;;  %v63_v15 = vld [vmem:[#allocation2 + $0xc8] sm:$0xff]  ;;  %v66_v17 = vld [vmem:[#allocation2 + $0xd0] sm:$0xff]  ;;  %v28_v22 = vand.u32 127, %v27_v21  ;;  %s733_s18 = smov 2   ;;  %s734_s19 = smov 4  }
   0x8   :  { %v46_v9 = vmul.f32 %v45_v3, %v44_v1  ;;  %v50_v10 = vmul.f32 %v49_v4, %v48_v2  ;;  %v55_v11 = vmul.f32 %v54_v6, %v53_v5  ;;  %v60_v13 = vmul.f32 %v59_v7, %v58_v8  ;;  %v76_v25 = vld [vmem:[#allocation2 + $0x20] sm:$0xff]  ;;  %v79_v26 = vld [vmem:[#allocation2 + $0x28] sm:$0xff]  ;;  %v83_v30 = vld [vmem:[#allocation2 + $0x30] sm:$0xff]  ;;  %s735_s20 = smov 126   ;;  %s736_s21 = smov 124  }
   0x9   :  { %v768_v23 = vand.u32 15, %v28_v22  ;;  %v87_v35 = vld [vmem:[#allocation2 + $0xd8] sm:$0xff]  ;;  %v90_v37 = vld [vmem:[#allocation2 + $0xe0] sm:$0xff]  ;;  %s737_s22 = smov 120  }
   0xa   :  { %v51_v12 = vadd.f32 %v50_v10, %v46_v9  ;;  %v141_v8 = vld [vmem:[#allocation2 + $0x38] sm:$0xff]  ;;  %v145_v9 = vld [vmem:[#allocation2 + $0x40] sm:$0xff] }
   0xb   :  { %vm41_vm0 = vcmp.ne.s32.totalorder %v768_v23, 0  ;;  %vm42_vm1 = vcmp.ne.s32.totalorder %v768_v23, 15  ;;  %vm93_vm2 = vcmp.ge.s32.totalorder %v768_v23, 1  ;;  %vm98_vm3 = vcmp.ge.s32.totalorder %v768_v23, 2  ;;  %v160_v21 = vld [vmem:[#allocation2 + $0x58] sm:$0xff] }
   0xc   :  { %v56_v14 = vadd.f32 %v55_v11, %v51_v12  ;;  %vm103_vm4 = vcmp.ge.s32.totalorder %v768_v23, 4  ;;  %vm108_vm5 = vcmp.ge.s32.totalorder %v768_v23, 8  ;;  %vm113_vm6 = vcmp.eq.s32.totalorder %v768_v23, 15 }
   0xd   :  { %v801_v54 = vadd.s32 1, %v768_v23  ;;  %v808_v58 = vadd.s32 2, %v768_v23  ;;  %v815_v62 = vadd.s32 4, %v768_v23  ;;  %v822_v3 = vadd.s32 8, %v768_v23 }
   0xe   :  { %v61_v16 = vadd.f32 %v60_v13, %v56_v14  ;;  %v150_v13 = vld [vmem:[#allocation2 + $0x48] sm:$0xff] }
   0xf   :  { %vm116_vm7 = vcmp.le.s32.totalorder %v801_v54, 15  ;;  %vm122_vm8 = vcmp.le.s32.totalorder %v808_v58, 15  ;;  %vm128_vm9 = vcmp.le.s32.totalorder %v815_v62, 15  ;;  %vm134_vm10 = vcmp.le.s32.totalorder %v822_v3, 15  ;;  %v565_v62 = vld [vmem:[#allocation2 + $0x260] sm:$0xff] }
  0x10   :  { %v64_v18 = vmul.f32 %v63_v15, %v61_v16 }
  0x12   :  { %v67_v19 = vadd.f32 %v66_v17, %v64_v18  ;;  %v155_v17 = vld [vmem:[#allocation2 + $0x50] sm:$0xff] }
  0x14   :  { %v68_v20 = vmax.f32 %v67_v19, 0.0 }
  0x16   :  { %69 = vrot.lane.b32.xlu0 %v68_v20, %s731_s0  ;;  %v80_v29 = vmul.f32 %v79_v26, %v68_v20  ;;  %v165_v26 = vld [vmem:[#allocation2 + $0x60] sm:$0xff] }
  0x1e   :  { %72 = vrot.lane.b32.xlu0 %v68_v20, %s732_s1 }
  0x88   :  { %v70_v24 = vpop.permute.xlu0 %69 }
  0x89   :  { %v71_v27 = vsel %vm41_vm0, %v70_v24, 0.0 }
  0x8a   :  { %v77_v28 = vmul.f32 %v76_v25, %v71_v27 }
  0x8c   :  { %v81_v33 = vadd.f32 %v80_v29, %v77_v28 }
  0x90   :  { %v73_v31 = vpop.permute.xlu0 %72 }
  0x91   :  { %v74_v32 = vsel %vm42_vm1, %v73_v31, 0.0 }
  0x92   :  { %v84_v34 = vmul.f32 %v83_v30, %v74_v32  ;;  %v170_v30 = vld [vmem:[#allocation2 + $0x68] sm:$0xff] }
  0x94   :  { %v85_v36 = vadd.f32 %v84_v34, %v81_v33  ;;  %v175_v34 = vld [vmem:[#allocation2 + $0x70] sm:$0xff] }
  0x96   :  { %v88_v38 = vmul.f32 %v87_v35, %v85_v36 }
  0x98   :  { %v91_v39 = vadd.f32 %v90_v37, %v88_v38 }
  0x9a   :  { %v776_v40 = vmax.f32 %v91_v39, 0.0  ;;  %v180_v39 = vld [vmem:[#allocation2 + $0xe8] sm:$0xff] }
  0x9c   :  { %94 = vrot.lane.b32.xlu1 %v776_v40, %s731_s0 }
 0x10e   :  { %v95_v41 = vpop.permute.xlu1 %94 }
 0x10f   :  { %v96_v42 = vsel %vm93_vm2, %v95_v41, 0.0 }
 0x110   :  { %v97_v43 = vadd.f32 %v96_v42, %v776_v40 }
 0x112   :  { %99 = vrot.lane.b32.xlu1 %v97_v43, %s733_s18 }
 0x184   :  { %v100_v44 = vpop.permute.xlu1 %99 }
 0x185   :  { %v101_v45 = vsel %vm98_vm3, %v100_v44, 0.0  ;;  %v184_v44 = vld [vmem:[#allocation2 + $0x78] sm:$0xff] }
 0x186   :  { %v102_v46 = vadd.f32 %v101_v45, %v97_v43  ;;  %v188_v45 = vld [vmem:[#allocation2 + $0x80] sm:$0xff] }
 0x188   :  { %104 = vrot.lane.b32.xlu2 %v102_v46, %s734_s19 }
 0x1e2   :  { %v105_v47 = vpop.permute.xlu2 %104 }
 0x1e3   :  { %v106_v48 = vsel %vm103_vm4, %v105_v47, 0.0 }
 0x1e4   :  { %v107_v49 = vadd.f32 %v106_v48, %v102_v46 }
 0x1e6   :  { %109 = vrot.lane.b32.xlu2 %v107_v49, %s730_s15 }
 0x240   :  { %v110_v50 = vpop.permute.xlu2 %109 }
 0x241   :  { %v111_v51 = vsel %vm108_vm5, %v110_v50, 0.0  ;;  %v193_v50 = vld [vmem:[#allocation2 + $0xf0] sm:$0xff] }
 0x242   :  { %v112_v52 = vadd.f32 %v111_v51, %v107_v49 }
 0x244   :  { %v114_v53 = vsel %vm113_vm6, %v112_v52, 0.0 }
 0x245   :  { %117 = vrot.lane.b32.xlu0 %v114_v53, %s732_s1 }
 0x2b7   :  { %v118_v55 = vpop.permute.xlu0 %117 }
 0x2b8   :  { %v119_v56 = vsel %vm116_vm7, %v118_v55, 0.0 }
 0x2b9   :  { %v120_v57 = vadd.f32 %v119_v56, %v114_v53 }
 0x2bb   :  { %123 = vrot.lane.b32.xlu1 %v120_v57, %s735_s20 }
 0x32d   :  { %v124_v59 = vpop.permute.xlu1 %123 }
 0x32e   :  { %v125_v60 = vsel %vm122_vm8, %v124_v59, 0.0 }
 0x32f   :  { %v126_v61 = vadd.f32 %v125_v60, %v120_v57 }
 0x331   :  { %129 = vrot.lane.b32.xlu2 %v126_v61, %s736_s21 }
 0x38b   :  { %v130_v63 = vpop.permute.xlu2 %129 }
 0x38c   :  { %v131_v1 = vsel %vm128_vm9, %v130_v63, 0.0 }
 0x38d   :  { %v132_v2 = vadd.f32 %v131_v1, %v126_v61 }
 0x38f   :  { %135 = vrot.lane.b32.xlu0 %v132_v2, %s737_s22 }
 0x401   :  { %v136_v4 = vpop.permute.xlu0 %135 }
 0x402   :  { %v137_v5 = vsel %vm134_vm10, %v136_v4, 0.0 }
 0x403   :  { %v138_v6 = vadd.f32 %v137_v5, %v132_v2 }
 0x405   :  { %v139_v7 = vmul.f32 0.0625, %v138_v6 }
 0x407   :  { %v142_v10 = vperm.slane %v139_v7, 0  ;;  %v146_v11 = vperm.slane %v139_v7, 1  ;;  %v151_v12 = vperm.slane %v139_v7, 2  ;;  %v156_v16 = vperm.slane %v139_v7, 3 }
 0x408   :  { %v161_v20 = vperm.slane %v139_v7, 4  ;;  %v166_v25 = vperm.slane %v139_v7, 5  ;;  %v171_v29 = vperm.slane %v139_v7, 6  ;;  %v176_v33 = vperm.slane %v139_v7, 7 }
 0x409   :  { %v143_v14 = vmul.f32 %v142_v10, %v141_v8  ;;  %v147_v15 = vmul.f32 %v146_v11, %v145_v9  ;;  %v152_v19 = vmul.f32 %v151_v12, %v150_v13  ;;  %v157_v24 = vmul.f32 %v156_v16, %v155_v17  ;;  %v216_v8 = vld [vmem:[#allocation2 + $0x88] sm:$0xff]  ;;  %v220_v9 = vld [vmem:[#allocation2 + $0x90] sm:$0xff]  ;;  %v225_v13 = vld [vmem:[#allocation2 + $0x98] sm:$0xff] }
 0x40a   :  { %v162_v28 = vmul.f32 %v161_v20, %v160_v21  ;;  %v167_v32 = vmul.f32 %v166_v25, %v165_v26  ;;  %v172_v36 = vmul.f32 %v171_v29, %v170_v30  ;;  %v177_v38 = vmul.f32 %v176_v33, %v175_v34  ;;  %v230_v17 = vld [vmem:[#allocation2 + $0xa0] sm:$0xff]  ;;  %v235_v21 = vld [vmem:[#allocation2 + $0xa8] sm:$0xff]  ;;  %v240_v26 = vld [vmem:[#allocation2 + $0xb0] sm:$0xff] }
 0x40b   :  { %v148_v18 = vadd.f32 %v147_v15, %v143_v14  ;;  %v245_v29 = vld [vmem:[#allocation2 + $0xb8] sm:$0xff]  ;;  %v250_v33 = vld [vmem:[#allocation2 + $0xc0] sm:$0xff] }
 0x40d   :  { %v153_v22 = vadd.f32 %v152_v19, %v148_v18 }
 0x40f   :  { %v158_v27 = vadd.f32 %v157_v24, %v153_v22 }
 0x411   :  { %v163_v31 = vadd.f32 %v162_v28, %v158_v27 }
 0x413   :  { %v168_v35 = vadd.f32 %v167_v32, %v163_v31 }
 0x415   :  { %v173_v37 = vadd.f32 %v172_v36, %v168_v35 }
 0x417   :  { %v178_v41 = vadd.f32 %v177_v38, %v173_v37  ;;  %v255_v38 = vld [vmem:[#allocation2 + $0xf8] sm:$0xff] }
 0x419   :  { %v181_v42 = vadd.f32 %v180_v39, %v178_v41  ;;  %v258_v41 = vld [vmem:[#allocation2 + $0x100] sm:$0xff] }
 0x41b   :  { %v182_v43 = vmax.f32 %v181_v42, 0.0 }
 0x41d   :  { %v185_v46 = vperm.slane %v182_v43, 0  ;;  %v189_v47 = vperm.slane %v182_v43, 1 }
 0x41f   :  { %v186_v48 = vmul.f32 %v185_v46, %v184_v44  ;;  %v190_v49 = vmul.f32 %v189_v47, %v188_v45  ;;  %v262_v45 = vld [vmem:[#allocation2 + $0x108] sm:$0xff]  ;;  %v266_v46 = vld [vmem:[#allocation2 + $0x110] sm:$0xff] }
 0x421   :  { %v191_v51 = vadd.f32 %v190_v49, %v186_v48 }
 0x423   :  { %v194_v52 = vadd.f32 %v193_v50, %v191_v51  ;;  %v271_v50 = vld [vmem:[#allocation2 + $0x118] sm:$0xff] }
 0x425   :  { %v677_v53 = vmul.f32 -1.442695, %v194_v52 }
 0x427   :  { %690 = vpow2.f32 %v677_v53 }
 0x42d   :  { %v691_v55 = vpop.eup %690 }
 0x42e   :  { %v198_v56 = vadd.f32 1.0, %v691_v55  ;;  %v276_v55 = vld [vmem:[#allocation2 + $0x120] sm:$0xff] }
 0x430   :  { %692 = vrcp.f32 %v198_v56  ;;  %v210_v61 = vand.u32 2147483648, %v198_v56  ;;  %v208_v1 = vand.u32 2147483647, %v198_v56  ;;  %vm204_vm12 = vweird.f32 %v198_v56 }
 0x432   :  { %v211_v4 = vor.u32 1.1754944e-38, %v210_v61  ;;  %vm209_vm14 = vcmp.eq.f32.partialorder %v208_v1, 8.507059e+37 }
 0x436   :  { %v693_v57 = vpop.eup %692 }
 0x437   :  { %v200_v59 = vmul.f32 %v693_v57, %v198_v56  ;;  %vm205_vm11 = vweird.f32 %v693_v57 }
 0x438   :  { %vm206_vm13 = vmor %vm204_vm12, %vm205_vm11 }
 0x439   :  { %v201_v60 = vsub.f32 1.0, %v200_v59 }
 0x43b   :  { %v202_v63 = vmul.f32 %v693_v57, %v201_v60 }
 0x43d   :  { %v203_v2 = vadd.f32 %v693_v57, %v202_v63  ;;  %v284_v63 = vld [vmem:[#allocation2 + $0x1d8] sm:$0xff] }
 0x43f   :  { %v207_v5 = vsel %vm206_vm13, %v693_v57, %v203_v2 }
 0x440   :  { %v212_v6 = vsel %vm209_vm14, %v211_v4, %v207_v5 }
 0x441   :  { %v214_v7 = vmul.f32 %v212_v6, %v776_v40  ;;  %v294_v6 = vld [vmem:[#allocation2 + $0x128] sm:$0xff] }
 0x443   :  { %v217_v10 = vperm.slane %v214_v7, 0  ;;  %v221_v11 = vperm.slane %v214_v7, 1  ;;  %v226_v12 = vperm.slane %v214_v7, 2  ;;  %v231_v16 = vperm.slane %v214_v7, 3 }
 0x444   :  { %v236_v20 = vperm.slane %v214_v7, 4  ;;  %v241_v25 = vperm.slane %v214_v7, 5  ;;  %v246_v28 = vperm.slane %v214_v7, 6  ;;  %v251_v32 = vperm.slane %v214_v7, 7  ;;  %v297_v7 = vld [vmem:[#allocation2 + $0x130] sm:$0xff] }
 0x445   :  { %v218_v14 = vmul.f32 %v217_v10, %v216_v8  ;;  %v222_v15 = vmul.f32 %v221_v11, %v220_v9  ;;  %v227_v19 = vmul.f32 %v226_v12, %v225_v13  ;;  %v232_v24 = vmul.f32 %v231_v16, %v230_v17  ;;  %v301_v9 = vld [vmem:[#allocation2 + $0x138] sm:$0xff]  ;;  %v305_v16 = vld [vmem:[#allocation2 + $0x1e0] sm:$0xff] }
 0x446   :  { %v237_v40 = vmul.f32 %v236_v20, %v235_v21  ;;  %v242_v31 = vmul.f32 %v241_v25, %v240_v26  ;;  %v247_v35 = vmul.f32 %v246_v28, %v245_v29  ;;  %v252_v37 = vmul.f32 %v251_v32, %v250_v33 }
 0x447   :  { %v223_v18 = vadd.f32 %v222_v15, %v218_v14 }
 0x449   :  { %v228_v22 = vadd.f32 %v227_v19, %v223_v18  ;;  %v308_v18 = vld [vmem:[#allocation2 + $0x1e8] sm:$0xff] }
 0x44b   :  { %v233_v27 = vadd.f32 %v232_v24, %v228_v22 }
 0x44d   :  { %v238_v30 = vadd.f32 %v237_v40, %v233_v27 }
 0x44f   :  { %v243_v34 = vadd.f32 %v242_v31, %v238_v30 }
 0x451   :  { %v248_v36 = vadd.f32 %v247_v35, %v243_v34 }
 0x453   :  { %v253_v39 = vadd.f32 %v252_v37, %v248_v36 }
 0x455   :  { %v256_v42 = vmul.f32 %v255_v38, %v253_v39 }
 0x457   :  { %v259_v43 = vadd.f32 %v258_v41, %v256_v42 }
 0x459   :  { %v829_v44 = vadd.f32 %v259_v43, %v760_v0  ;;  %v281_v0 = vld [vmem:[#allocation2 + $0x1d0] sm:$0xff] }
 0x45b   :  { %v263_v47 = vperm.slane %v829_v44, 0  ;;  %v267_v48 = vperm.slane %v829_v44, 1  ;;  %v272_v49 = vperm.slane %v829_v44, 2  ;;  %v277_v53 = vperm.slane %v829_v44, 3 }
 0x45d   :  { %v264_v51 = vmul.f32 %v263_v47, %v262_v45  ;;  %v268_v52 = vmul.f32 %v267_v48, %v266_v46  ;;  %v273_v57 = vmul.f32 %v272_v49, %v271_v50  ;;  %v278_v60 = vmul.f32 %v277_v53, %v276_v55  ;;  %v346_v50 = vld [vmem:[#allocation2 + $0x140] sm:$0xff] }
 0x45f   :  { %v269_v56 = vadd.f32 %v268_v52, %v264_v51  ;;  %v350_v51 = vld [vmem:[#allocation2 + $0x148] sm:$0xff] }
 0x461   :  { %v274_v59 = vadd.f32 %v273_v57, %v269_v56  ;;  %v355_v56 = vld [vmem:[#allocation2 + $0x150] sm:$0xff] }
 0x463   :  { %v279_v61 = vadd.f32 %v278_v60, %v274_v59 }
 0x465   :  { %v282_v1 = vmul.f32 %v281_v0, %v279_v61  ;;  %v360_v0 = vld [vmem:[#allocation2 + $0x158] sm:$0xff] }
 0x467   :  { %v285_v2 = vadd.f32 %v284_v63, %v282_v1 }
 0x469   :  { %v286_v4 = vmax.f32 %v285_v2, 0.0  ;;  %v365_v2 = vld [vmem:[#allocation2 + $0x160] sm:$0xff] }
 0x46b   :  { %290 = vrot.lane.b32.xlu2 %v286_v4, %s732_s1  ;;  %287 = vrot.lane.b32.xlu1 %v286_v4, %s731_s0  ;;  %v298_v13 = vmul.f32 %v297_v7, %v286_v4  ;;  %v370_v7 = vld [vmem:[#allocation2 + $0x168] sm:$0xff] }
 0x4c5   :  { %v291_v5 = vpop.permute.xlu2 %290 }
 0x4c6   :  { %v292_v10 = vsel %vm42_vm1, %v291_v5, 0.0 }
 0x4c7   :  { %v302_v14 = vmul.f32 %v301_v9, %v292_v10 }
 0x4dd   :  { %v288_v8 = vpop.permute.xlu1 %287 }
 0x4de   :  { %v289_v11 = vsel %vm41_vm0, %v288_v8, 0.0 }
 0x4df   :  { %v295_v12 = vmul.f32 %v294_v6, %v289_v11  ;;  %v375_v11 = vld [vmem:[#allocation2 + $0x170] sm:$0xff] }
 0x4e1   :  { %v299_v15 = vadd.f32 %v298_v13, %v295_v12 }
 0x4e3   :  { %v303_v17 = vadd.f32 %v302_v14, %v299_v15  ;;  %v380_v15 = vld [vmem:[#allocation2 + $0x178] sm:$0xff] }
 0x4e5   :  { %v306_v19 = vmul.f32 %v305_v16, %v303_v17 }
 0x4e7   :  { %v309_v20 = vadd.f32 %v308_v18, %v306_v19 }
 0x4e9   :  { %v841_v21 = vmax.f32 %v309_v20, 0.0  ;;  %v385_v20 = vld [vmem:[#allocation2 + $0x1f0] sm:$0xff] }
 0x4eb   :  { %311 = vrot.lane.b32.xlu0 %v841_v21, %s731_s0 }
 0x55d   :  { %v312_v22 = vpop.permute.xlu0 %311 }
 0x55e   :  { %v313_v24 = vsel %vm93_vm2, %v312_v22, 0.0 }
 0x55f   :  { %v314_v25 = vadd.f32 %v313_v24, %v841_v21 }
 0x561   :  { %315 = vrot.lane.b32.xlu1 %v314_v25, %s733_s18 }
 0x5d3   :  { %v316_v26 = vpop.permute.xlu1 %315 }
 0x5d4   :  { %v317_v27 = vsel %vm98_vm3, %v316_v26, 0.0  ;;  %v389_v26 = vld [vmem:[#allocation2 + $0x180] sm:$0xff] }
 0x5d5   :  { %v318_v40 = vadd.f32 %v317_v27, %v314_v25  ;;  %v393_v27 = vld [vmem:[#allocation2 + $0x188] sm:$0xff] }
 0x5d7   :  { %319 = vrot.lane.b32.xlu2 %v318_v40, %s734_s19 }
 0x631   :  { %v320_v28 = vpop.permute.xlu2 %319 }
 0x632   :  { %v321_v29 = vsel %vm103_vm4, %v320_v28, 0.0 }
 0x633   :  { %v322_v30 = vadd.f32 %v321_v29, %v318_v40 }
 0x635   :  { %323 = vrot.lane.b32.xlu0 %v322_v30, %s730_s15 }
 0x6a7   :  { %v324_v31 = vpop.permute.xlu0 %323 }
 0x6a8   :  { %v325_v32 = vsel %vm108_vm5, %v324_v31, 0.0  ;;  %v398_v31 = vld [vmem:[#allocation2 + $0x1f8] sm:$0xff] }
 0x6a9   :  { %v326_v33 = vadd.f32 %v325_v32, %v322_v30 }
 0x6ab   :  { %v327_v34 = vsel %vm113_vm6, %v326_v33, 0.0 }
 0x6ac   :  { %328 = vrot.lane.b32.xlu1 %v327_v34, %s732_s1 }
 0x71e   :  { %v329_v35 = vpop.permute.xlu1 %328 }
 0x71f   :  { %v330_v36 = vsel %vm116_vm7, %v329_v35, 0.0 }
 0x720   :  { %v331_v37 = vadd.f32 %v330_v36, %v327_v34 }
 0x722   :  { %332 = vrot.lane.b32.xlu2 %v331_v37, %s735_s20 }
 0x77c   :  { %v333_v38 = vpop.permute.xlu2 %332 }
 0x77d   :  { %v334_v39 = vsel %vm122_vm8, %v333_v38, 0.0 }
 0x77e   :  { %v335_v41 = vadd.f32 %v334_v39, %v331_v37 }
 0x780   :  { %336 = vrot.lane.b32.xlu0 %v335_v41, %s736_s21 }
 0x7f2   :  { %v337_v42 = vpop.permute.xlu0 %336 }
 0x7f3   :  { %v338_v43 = vsel %vm128_vm9, %v337_v42, 0.0 }
 0x7f4   :  { %v339_v45 = vadd.f32 %v338_v43, %v335_v41 }
 0x7f6   :  { %340 = vrot.lane.b32.xlu1 %v339_v45, %s737_s22 }
 0x868   :  { %v341_v46 = vpop.permute.xlu1 %340 }
 0x869   :  { %v342_v47 = vsel %vm134_vm10, %v341_v46, 0.0 }
 0x86a   :  { %v343_v48 = vadd.f32 %v342_v47, %v339_v45 }
 0x86c   :  { %v344_v49 = vmul.f32 0.0625, %v343_v48 }
 0x86e   :  { %v347_v52 = vperm.slane %v344_v49, 0  ;;  %v351_v53 = vperm.slane %v344_v49, 1  ;;  %v356_v55 = vperm.slane %v344_v49, 2  ;;  %v361_v60 = vperm.slane %v344_v49, 3 }
 0x86f   :  { %v366_v1 = vperm.slane %v344_v49, 4  ;;  %v371_v6 = vperm.slane %v344_v49, 5  ;;  %v376_v10 = vperm.slane %v344_v49, 6  ;;  %v381_v14 = vperm.slane %v344_v49, 7 }
 0x870   :  { %v348_v57 = vmul.f32 %v347_v52, %v346_v50  ;;  %v352_v59 = vmul.f32 %v351_v53, %v350_v51  ;;  %v357_v63 = vmul.f32 %v356_v55, %v355_v56  ;;  %v362_v5 = vmul.f32 %v361_v60, %v360_v0  ;;  %v421_v50 = vld [vmem:[#allocation2 + $0x190] sm:$0xff]  ;;  %v425_v51 = vld [vmem:[#allocation2 + $0x198] sm:$0xff]  ;;  %v430_v56 = vld [vmem:[#allocation2 + $0x1a0] sm:$0xff] }
 0x871   :  { %v367_v9 = vmul.f32 %v366_v1, %v365_v2  ;;  %v372_v13 = vmul.f32 %v371_v6, %v370_v7  ;;  %v377_v17 = vmul.f32 %v376_v10, %v375_v11  ;;  %v382_v19 = vmul.f32 %v381_v14, %v380_v15  ;;  %v435_v0 = vld [vmem:[#allocation2 + $0x1a8] sm:$0xff]  ;;  %v440_v2 = vld [vmem:[#allocation2 + $0x1b0] sm:$0xff]  ;;  %v445_v7 = vld [vmem:[#allocation2 + $0x1b8] sm:$0xff] }
 0x872   :  { %v353_v61 = vadd.f32 %v352_v59, %v348_v57  ;;  %v450_v10 = vld [vmem:[#allocation2 + $0x1c0] sm:$0xff]  ;;  %v455_v14 = vld [vmem:[#allocation2 + $0x1c8] sm:$0xff] }
 0x874   :  { %v358_v4 = vadd.f32 %v357_v63, %v353_v61 }
 0x876   :  { %v363_v8 = vadd.f32 %v362_v5, %v358_v4 }
 0x878   :  { %v368_v12 = vadd.f32 %v367_v9, %v363_v8 }
 0x87a   :  { %v373_v16 = vadd.f32 %v372_v13, %v368_v12 }
 0x87c   :  { %v378_v18 = vadd.f32 %v377_v17, %v373_v16 }
 0x87e   :  { %v383_v22 = vadd.f32 %v382_v19, %v378_v18  ;;  %v460_v19 = vld [vmem:[#allocation2 + $0x200] sm:$0xff] }
 0x880   :  { %v386_v24 = vadd.f32 %v385_v20, %v383_v22  ;;  %v463_v22 = vld [vmem:[#allocation2 + $0x208] sm:$0xff] }
 0x882   :  { %v387_v25 = vmax.f32 %v386_v24, 0.0 }
 0x884   :  { %v390_v40 = vperm.slane %v387_v25, 0  ;;  %v394_v28 = vperm.slane %v387_v25, 1 }
 0x886   :  { %v391_v29 = vmul.f32 %v390_v40, %v389_v26  ;;  %v395_v30 = vmul.f32 %v394_v28, %v393_v27  ;;  %v467_v27 = vld [vmem:[#allocation2 + $0x210] sm:$0xff]  ;;  %v471_v40 = vld [vmem:[#allocation2 + $0x218] sm:$0xff] }
 0x888   :  { %v396_v32 = vadd.f32 %v395_v30, %v391_v29 }
 0x88a   :  { %v399_v33 = vadd.f32 %v398_v31, %v396_v32  ;;  %v476_v31 = vld [vmem:[#allocation2 + $0x220] sm:$0xff] }
 0x88c   :  { %v678_v34 = vmul.f32 -1.442695, %v399_v33 }
 0x88e   :  { %694 = vpow2.f32 %v678_v34 }
 0x894   :  { %v695_v35 = vpop.eup %694 }
 0x895   :  { %v403_v36 = vadd.f32 1.0, %v695_v35  ;;  %v481_v35 = vld [vmem:[#allocation2 + $0x228] sm:$0xff] }
 0x897   :  { %696 = vrcp.f32 %v403_v36  ;;  %v415_v41 = vand.u32 2147483648, %v403_v36  ;;  %v413_v43 = vand.u32 2147483647, %v403_v36  ;;  %vm409_vm11 = vweird.f32 %v403_v36 }
 0x899   :  { %v416_v46 = vor.u32 1.1754944e-38, %v415_v41  ;;  %vm414_vm13 = vcmp.eq.f32.partialorder %v413_v43, 8.507059e+37 }
 0x89d   :  { %v697_v37 = vpop.eup %696 }
 0x89e   :  { %v405_v38 = vmul.f32 %v697_v37, %v403_v36  ;;  %vm410_vm15 = vweird.f32 %v697_v37 }
 0x89f   :  { %vm411_vm12 = vmor %vm409_vm11, %vm410_vm15 }
 0x8a0   :  { %v406_v39 = vsub.f32 1.0, %v405_v38 }
 0x8a2   :  { %v407_v42 = vmul.f32 %v697_v37, %v406_v39 }
 0x8a4   :  { %v408_v45 = vadd.f32 %v697_v37, %v407_v42  ;;  %v489_v42 = vld [vmem:[#allocation2 + $0x2e0] sm:$0xff] }
 0x8a6   :  { %v412_v47 = vsel %vm411_vm12, %v697_v37, %v408_v45 }
 0x8a7   :  { %v417_v48 = vsel %vm414_vm13, %v416_v46, %v412_v47 }
 0x8a8   :  { %v419_v49 = vmul.f32 %v417_v48, %v841_v21  ;;  %v499_v48 = vld [vmem:[#allocation2 + $0x230] sm:$0xff] }
 0x8aa   :  { %v422_v52 = vperm.slane %v419_v49, 0  ;;  %v426_v53 = vperm.slane %v419_v49, 1  ;;  %v431_v55 = vperm.slane %v419_v49, 2  ;;  %v436_v60 = vperm.slane %v419_v49, 3 }
 0x8ab   :  { %v441_v1 = vperm.slane %v419_v49, 4  ;;  %v446_v6 = vperm.slane %v419_v49, 5  ;;  %v451_v9 = vperm.slane %v419_v49, 6  ;;  %v456_v13 = vperm.slane %v419_v49, 7 }
 0x8ac   :  { %v423_v57 = vmul.f32 %v422_v52, %v421_v50  ;;  %v427_v59 = vmul.f32 %v426_v53, %v425_v51  ;;  %v432_v63 = vmul.f32 %v431_v55, %v430_v56  ;;  %v437_v5 = vmul.f32 %v436_v60, %v435_v0  ;;  %v502_v50 = vld [vmem:[#allocation2 + $0x238] sm:$0xff]  ;;  %v506_v52 = vld [vmem:[#allocation2 + $0x240] sm:$0xff]  ;;  %v510_v60 = vld [vmem:[#allocation2 + $0x2e8] sm:$0xff] }
 0x8ad   :  { %v442_v21 = vmul.f32 %v441_v1, %v440_v2  ;;  %v447_v12 = vmul.f32 %v446_v6, %v445_v7  ;;  %v452_v16 = vmul.f32 %v451_v9, %v450_v10  ;;  %v457_v18 = vmul.f32 %v456_v13, %v455_v14 }
 0x8ae   :  { %v428_v61 = vadd.f32 %v427_v59, %v423_v57 }
 0x8b0   :  { %v433_v4 = vadd.f32 %v432_v63, %v428_v61  ;;  %v513_v61 = vld [vmem:[#allocation2 + $0x2f0] sm:$0xff] }
 0x8b2   :  { %v438_v8 = vadd.f32 %v437_v5, %v433_v4 }
 0x8b4   :  { %v443_v11 = vadd.f32 %v442_v21, %v438_v8 }
 0x8b6   :  { %v448_v15 = vadd.f32 %v447_v12, %v443_v11 }
 0x8b8   :  { %v453_v17 = vadd.f32 %v452_v16, %v448_v15 }
 0x8ba   :  { %v458_v20 = vadd.f32 %v457_v18, %v453_v17 }
 0x8bc   :  { %v461_v24 = vmul.f32 %v460_v19, %v458_v20 }
 0x8be   :  { %v464_v25 = vadd.f32 %v463_v22, %v461_v24 }
 0x8c0   :  { %v873_v26 = vadd.f32 %v464_v25, %v829_v44  ;;  %v486_v44 = vld [vmem:[#allocation2 + $0x2d8] sm:$0xff] }
 0x8c2   :  { %v468_v28 = vperm.slane %v873_v26, 0  ;;  %v472_v29 = vperm.slane %v873_v26, 1  ;;  %v477_v30 = vperm.slane %v873_v26, 2  ;;  %v482_v34 = vperm.slane %v873_v26, 3 }
 0x8c4   :  { %v469_v32 = vmul.f32 %v468_v28, %v467_v27  ;;  %v473_v33 = vmul.f32 %v472_v29, %v471_v40  ;;  %v478_v37 = vmul.f32 %v477_v30, %v476_v31  ;;  %v483_v39 = vmul.f32 %v482_v34, %v481_v35  ;;  %v551_v29 = vld [vmem:[#allocation2 + $0x248] sm:$0xff]  ;;  %v555_v30 = vld [vmem:[#allocation2 + $0x250] sm:$0xff] }
 0x8c6   :  { %v474_v36 = vadd.f32 %v473_v33, %v469_v32  ;;  %v560_v33 = vld [vmem:[#allocation2 + $0x258] sm:$0xff] }
 0x8c8   :  { %v479_v38 = vadd.f32 %v478_v37, %v474_v36 }
 0x8ca   :  { %v484_v41 = vadd.f32 %v483_v39, %v479_v38 }
 0x8cc   :  { %v487_v43 = vmul.f32 %v486_v44, %v484_v41  ;;  %v570_v44 = vld [vmem:[#allocation2 + $0x268] sm:$0xff] }
 0x8ce   :  { %v490_v45 = vadd.f32 %v489_v42, %v487_v43  ;;  %v575_v43 = vld [vmem:[#allocation2 + $0x270] sm:$0xff] }
 0x8d0   :  { %v491_v46 = vmax.f32 %v490_v45, 0.0 }
 0x8d2   :  { %495 = vrot.lane.b32.xlu0 %v491_v46, %s732_s1  ;;  %492 = vrot.lane.b32.xlu2 %v491_v46, %s731_s0  ;;  %v503_v53 = vmul.f32 %v502_v50, %v491_v46 }
 0x92c   :  { %v493_v47 = vpop.permute.xlu2 %492 }
 0x92d   :  { %v494_v49 = vsel %vm41_vm0, %v493_v47, 0.0 }
 0x92e   :  { %v500_v51 = vmul.f32 %v499_v48, %v494_v49  ;;  %v580_v48 = vld [vmem:[#allocation2 + $0x278] sm:$0xff] }
 0x930   :  { %v504_v57 = vadd.f32 %v503_v53, %v500_v51 }
 0x944   :  { %v496_v55 = vpop.permute.xlu0 %495 }
 0x945   :  { %v497_v56 = vsel %vm42_vm1, %v496_v55, 0.0 }
 0x946   :  { %v507_v59 = vmul.f32 %v506_v52, %v497_v56  ;;  %v585_v52 = vld [vmem:[#allocation2 + $0x280] sm:$0xff] }
 0x948   :  { %v508_v0 = vadd.f32 %v507_v59, %v504_v57  ;;  %v590_v59 = vld [vmem:[#allocation2 + $0x2f8] sm:$0xff] }
 0x94a   :  { %v511_v63 = vmul.f32 %v510_v60, %v508_v0 }
 0x94c   :  { %v514_v1 = vadd.f32 %v513_v61, %v511_v63  ;;  %v594_v63 = vld [vmem:[#allocation2 + $0x288] sm:$0xff] }
 0x94e   :  { %v885_v2 = vmax.f32 %v514_v1, 0.0  ;;  %v598_v1 = vld [vmem:[#allocation2 + $0x290] sm:$0xff] }
 0x950   :  { %516 = vrot.lane.b32.xlu1 %v885_v2, %s731_s0 }
 0x9c2   :  { %v517_v4 = vpop.permute.xlu1 %516 }
 0x9c3   :  { %v518_v5 = vsel %vm93_vm2, %v517_v4, 0.0 }
 0x9c4   :  { %v519_v6 = vadd.f32 %v518_v5, %v885_v2 }
 0x9c6   :  { %520 = vrot.lane.b32.xlu2 %v519_v6, %s733_s18 }
 0xa20   :  { %v521_v7 = vpop.permute.xlu2 %520 }
 0xa21   :  { %v522_v8 = vsel %vm98_vm3, %v521_v7, 0.0 }
 0xa22   :  { %v523_v21 = vadd.f32 %v522_v8, %v519_v6  ;;  %v603_v8 = vld [vmem:[#allocation2 + $0x300] sm:$0xff] }
 0xa24   :  { %524 = vrot.lane.b32.xlu0 %v523_v21, %s734_s19 }
 0xa96   :  { %v525_v9 = vpop.permute.xlu0 %524 }
 0xa97   :  { %v526_v10 = vsel %vm103_vm4, %v525_v9, 0.0 }
 0xa98   :  { %v527_v11 = vadd.f32 %v526_v10, %v523_v21 }
 0xa9a   :  { %528 = vrot.lane.b32.xlu1 %v527_v11, %s730_s15 }
 0xb0c   :  { %v529_v12 = vpop.permute.xlu1 %528 }
 0xb0d   :  { %v530_v13 = vsel %vm108_vm5, %v529_v12, 0.0 }
 0xb0e   :  { %v531_v14 = vadd.f32 %v530_v13, %v527_v11 }
 0xb10   :  { %v532_v15 = vsel %vm113_vm6, %v531_v14, 0.0 }
 0xb11   :  { %533 = vrot.lane.b32.xlu2 %v532_v15, %s732_s1 }
 0xb6b   :  { %v534_v16 = vpop.permute.xlu2 %533 }
 0xb6c   :  { %v535_v17 = vsel %vm116_vm7, %v534_v16, 0.0 }
 0xb6d   :  { %v536_v18 = vadd.f32 %v535_v17, %v532_v15 }
 0xb6f   :  { %537 = vrot.lane.b32.xlu0 %v536_v18, %s735_s20 }
 0xbe1   :  { %v538_v19 = vpop.permute.xlu0 %537 }
 0xbe2   :  { %v539_v20 = vsel %vm122_vm8, %v538_v19, 0.0 }
 0xbe3   :  { %v540_v22 = vadd.f32 %v539_v20, %v536_v18 }
 0xbe5   :  { %541 = vrot.lane.b32.xlu1 %v540_v22, %s736_s21 }
 0xc57   :  { %v542_v24 = vpop.permute.xlu1 %541 }
 0xc58   :  { %v543_v23 = vsel %vm128_vm9, %v542_v24, 0.0 }
 0xc59   :  { %v544_v25 = vadd.f32 %v543_v23, %v540_v22 }
 0xc5b   :  { %545 = vrot.lane.b32.xlu2 %v544_v25, %s737_s22 }
 0xcb5   :  { %v546_v27 = vpop.permute.xlu2 %545 }
 0xcb6   :  { %v547_v54 = vsel %vm134_vm10, %v546_v27, 0.0  ;;  %v630_v27 = vld [vmem:[#allocation2 + $0x2a0] sm:$0xff] }
 0xcb7   :  { %v548_v40 = vadd.f32 %v547_v54, %v544_v25  ;;  %v626_v25 = vld [vmem:[#allocation2 + $0x298] sm:$0xff] }
 0xcb9   :  { %v549_v28 = vmul.f32 0.0625, %v548_v40 }
 0xcbb   :  { %v552_v58 = vperm.slane %v549_v28, 0  ;;  %v556_v31 = vperm.slane %v549_v28, 1  ;;  %v561_v32 = vperm.slane %v549_v28, 2  ;;  %v566_v36 = vperm.slane %v549_v28, 3 }
 0xcbc   :  { %v571_v39 = vperm.slane %v549_v28, 4  ;;  %v576_v3 = vperm.slane %v549_v28, 5  ;;  %v581_v47 = vperm.slane %v549_v28, 6  ;;  %v586_v51 = vperm.slane %v549_v28, 7 }
 0xcbd   :  { %v553_v34 = vmul.f32 %v552_v58, %v551_v29  ;;  %v557_v35 = vmul.f32 %v556_v31, %v555_v30  ;;  %v562_v38 = vmul.f32 %v561_v32, %v560_v33  ;;  %v567_v42 = vmul.f32 %v566_v36, %v565_v62  ;;  %v635_v29 = vld [vmem:[#allocation2 + $0x2a8] sm:$0xff]  ;;  %v640_v32 = vld [vmem:[#allocation2 + $0x2b0] sm:$0xff]  ;;  %v645_v36 = vld [vmem:[#allocation2 + $0x2b8] sm:$0xff] }
 0xcbe   :  { %v572_v46 = vmul.f32 %v571_v39, %v570_v44  ;;  %v577_v50 = vmul.f32 %v576_v3, %v575_v43  ;;  %v582_v55 = vmul.f32 %v581_v47, %v580_v48  ;;  %v587_v57 = vmul.f32 %v586_v51, %v585_v52  ;;  %v650_v39 = vld [vmem:[#allocation2 + $0x2c0] sm:$0xff]  ;;  %v665_v51 = vld [vmem:[#allocation2 + $0x308] sm:$0xff] }
 0xcbf   :  { %v558_v37 = vadd.f32 %v557_v35, %v553_v34 }
 0xcc1   :  { %v563_v41 = vadd.f32 %v562_v38, %v558_v37 }
 0xcc3   :  { %v568_v45 = vadd.f32 %v567_v42, %v563_v41  ;;  %v655_v42 = vld [vmem:[#allocation2 + $0x2c8] sm:$0xff] }
 0xcc5   :  { %v573_v49 = vadd.f32 %v572_v46, %v568_v45  ;;  %v660_v46 = vld [vmem:[#allocation2 + $0x2d0] sm:$0xff] }
 0xcc7   :  { %v578_v53 = vadd.f32 %v577_v50, %v573_v49 }
 0xcc9   :  { %v583_v56 = vadd.f32 %v582_v55, %v578_v53  ;;  %v668_v53 = vld [vmem:[#allocation2 + $0x310] sm:$0xff] }
 0xccb   :  { %v588_v60 = vadd.f32 %v587_v57, %v583_v56 }
 0xccd   :  { %v591_v0 = vadd.f32 %v590_v59, %v588_v60 }
 0xccf   :  { %v592_v61 = vmax.f32 %v591_v0, 0.0 }
 0xcd1   :  { %v595_v4 = vperm.slane %v592_v61, 0  ;;  %v599_v5 = vperm.slane %v592_v61, 1 }
 0xcd3   :  { %v596_v6 = vmul.f32 %v595_v4, %v594_v63  ;;  %v600_v7 = vmul.f32 %v599_v5, %v598_v1 }
 0xcd5   :  { %v601_v21 = vadd.f32 %v600_v7, %v596_v6 }
 0xcd7   :  { %v604_v9 = vadd.f32 %v603_v8, %v601_v21 }
 0xcd9   :  { %v679_v10 = vmul.f32 -1.442695, %v604_v9 }
 0xcdb   :  { %698 = vpow2.f32 %v679_v10 }
 0xce1   :  { %v699_v11 = vpop.eup %698 }
 0xce2   :  { %v608_v12 = vadd.f32 1.0, %v699_v11 }
 0xce4   :  { %700 = vrcp.f32 %v608_v12  ;;  %v620_v16 = vand.u32 2147483648, %v608_v12  ;;  %v618_v18 = vand.u32 2147483647, %v608_v12  ;;  %vm614_vm1 = vweird.f32 %v608_v12 }
 0xce6   :  { %v621_v20 = vor.u32 1.1754944e-38, %v620_v16  ;;  %vm619_vm3 = vcmp.eq.f32.partialorder %v618_v18, 8.507059e+37 }
 0xcea   :  { %v701_v13 = vpop.eup %700 }
 0xceb   :  { %v610_v14 = vmul.f32 %v701_v13, %v608_v12  ;;  %vm615_vm0 = vweird.f32 %v701_v13 }
 0xcec   :  { %vm616_vm2 = vmor %vm614_vm1, %vm615_vm0 }
 0xced   :  { %v611_v15 = vsub.f32 1.0, %v610_v14 }
 0xcef   :  { %v612_v17 = vmul.f32 %v701_v13, %v611_v15 }
 0xcf1   :  { %v613_v19 = vadd.f32 %v701_v13, %v612_v17 }
 0xcf3   :  { %v617_v22 = vsel %vm616_vm2, %v701_v13, %v613_v19 }
 0xcf4   :  { %v622_v24 = vsel %vm619_vm3, %v621_v20, %v617_v22 }
 0xcf5   :  { %v624_v23 = vmul.f32 %v622_v24, %v885_v2 }
 0xcf7   :  { %v627_v54 = vperm.slane %v624_v23, 0  ;;  %v631_v40 = vperm.slane %v624_v23, 1  ;;  %v636_v28 = vperm.slane %v624_v23, 2  ;;  %v641_v31 = vperm.slane %v624_v23, 3 }
 0xcf8   :  { %v646_v35 = vperm.slane %v624_v23, 4  ;;  %v651_v38 = vperm.slane %v624_v23, 5  ;;  %v656_v41 = vperm.slane %v624_v23, 6  ;;  %v661_v45 = vperm.slane %v624_v23, 7 }
 0xcf9   :  { %v628_v30 = vmul.f32 %v627_v54, %v626_v25  ;;  %v632_v58 = vmul.f32 %v631_v40, %v630_v27  ;;  %v637_v34 = vmul.f32 %v636_v28, %v635_v29  ;;  %v642_v37 = vmul.f32 %v641_v31, %v640_v32 }
 0xcfa   :  { %v647_v2 = vmul.f32 %v646_v35, %v645_v36  ;;  %v652_v43 = vmul.f32 %v651_v38, %v650_v39  ;;  %v657_v48 = vmul.f32 %v656_v41, %v655_v42  ;;  %v662_v50 = vmul.f32 %v661_v45, %v660_v46 }
 0xcfb   :  { %v633_v33 = vadd.f32 %v632_v58, %v628_v30 }
 0xcfd   :  { %v638_v62 = vadd.f32 %v637_v34, %v633_v33 }
 0xcff   :  { %v643_v44 = vadd.f32 %v642_v37, %v638_v62 }
 0xd01   :  { %v648_v3 = vadd.f32 %v647_v2, %v643_v44 }
 0xd03   :  { %v653_v47 = vadd.f32 %v652_v43, %v648_v3 }
 0xd05   :  { %v658_v49 = vadd.f32 %v657_v48, %v653_v47 }
 0xd07   :  { %v663_v52 = vadd.f32 %v662_v50, %v658_v49 }
 0xd09   :  { %v666_v55 = vmul.f32 %v665_v51, %v663_v52 }
 0xd0b   :  { %v669_v56 = vadd.f32 %v668_v53, %v666_v55 }
 0xd0d   :  { %v670_v57 = vadd.f32 %v669_v56, %v873_v26 }
 0xd0f   :  { %671 = vst [vmem:[%s922_s2] sm:$0xff] %v670_v57 }
 0xd10   :  { %676 = vsyncpa [#allocation3], 1 }

</bundles_post_ra>
